<compile_context>
chip_gen: v6e
topology: v6e:2x2x1
jax: 0.10.0
libtpu: 0.0.40
codegen_flags: <defaults>
</compile_context>

<pallas_src>
import functools
import math

import jax
import jax.numpy as jnp
from jax.experimental import pallas as pl
from jax.experimental.pallas import tpu as pltpu


def _round_up(x, m):
    return (x + m - 1) // m * m


# ---------------------------------------------------------------------------
# Fused decoder kernel (whole horizon in one pallas_call, grid=(shards, Q))
# ---------------------------------------------------------------------------
def _decoder_kernel(tf_ref,                                   # (Q,) int32 in SMEM
                    tail_ref, val_ref, h0_ref, a_ref,
                    wru_ref, bru_ref, wc_ref, bc_ref, wo_ref, bo_ref,
                    out_ref,
                    h_ref, x_ref, z_ref, u_ref, terms_ref,
                    *, B, H, F_pad, n_adjs, K):
    """One decode step q (grid axis 1) for one batch shard (grid axis 0).

    Activation layout: (B, feature, N_pad) -- batch & features on sublanes,
    padded nodes on lanes.  Node mixing is one (B*F_pad, N_pad) @ (N_pad,
    N_pad) matmul per diffusion term; gate contractions are one deep
    (gdim, M*F_pad) @ (M*F_pad, N_pad) matmul per batch element per path.
    """
    q = pl.program_id(1)

    @pl.when(q == 0)
    def _init():
        h_ref[...] = h0_ref[...]
        x_ref[...] = jnp.zeros_like(x_ref)

    # ---- assemble gconv input z = [h ; x ; cov ; 0-pad] -------------------
    # Tail block ([x-slot ; cov ; zero pad], sublane-aligned) is prebuilt
    # glue-side; the fed-back x is injected with a branch-free select so the
    # whole tail is stored as one aligned block (no masked 1-row stores).
    tail = tail_ref[0]                                         # (B, F_tail, N_pad)
    row = jax.lax.broadcasted_iota(jnp.int32, tail.shape, 1)
    tail = jnp.where(row == 0, x_ref[...], tail)
    z_ref[:, 0:H, :] = h_ref[...]
    z_ref[:, H:F_pad, :] = tail

    def stage_terms():
        """Chebyshev diffusion: stage all M bf16 terms into terms_ref.

        Recursion state stays f32; each term is cast to bf16 once and reused
        for both the node-mix MXU input and the staged gate buffer.
        """
        z_f32 = z_ref[...]                                     # (B, F_pad, N_pad)
        z_bf = z_f32.astype(jnp.bfloat16)
        terms_ref[:, 0:F_pad, :] = z_bf

        def mix(t_bf, amat):
            # One batched node-mixing matmul per term: contraction over N_pad.
            flat = t_bf.reshape(B * F_pad, -1)
            out = jnp.dot(flat, amat, preferred_element_type=jnp.float32)
            return out.reshape(z_f32.shape)

        slot = 1
        if K >= 1:
            for a in range(n_adjs):
                a1 = a_ref[0, a]                               # A^T       (bf16)
                a2 = a_ref[1, a]                               # 2 * A^T   (bf16)
                t_km2 = z_f32
                t_km1 = mix(z_bf, a1)                          # f32
                t_km1_bf = t_km1.astype(jnp.bfloat16)
                terms_ref[:, slot * F_pad:(slot + 1) * F_pad, :] = t_km1_bf
                slot += 1
                for _ in range(2, K + 1):
                    t_k = mix(t_km1_bf, a2) - t_km2            # f32 recursion state
                    t_k_bf = t_k.astype(jnp.bfloat16)
                    terms_ref[:, slot * F_pad:(slot + 1) * F_pad, :] = t_k_bf
                    slot += 1
                    t_km2, t_km1_bf = t_km1, t_k_bf
                    t_km1 = t_k

    # ---- path 1: fused reset/update gates (one deep matmul per batch elem)
    stage_terms()
    for b in range(B):
        ru_b = jax.nn.sigmoid(
            jnp.dot(wru_ref[...], terms_ref[b],
                    preferred_element_type=jnp.float32) + bru_ref[...])
        u_ref[b] = ru_b[H:2 * H, :]
        z_ref[b, 0:H, :] = ru_b[0:H, :] * h_ref[b]             # r * h for path 2

    # ---- path 2: candidate, state update, projection, teacher forcing -----
    stage_terms()
    tf = (tf_ref[q] > 0).astype(jnp.float32)
    for b in range(B):
        c_b = jnp.tanh(
            jnp.dot(wc_ref[...], terms_ref[b],
                    preferred_element_type=jnp.float32) + bc_ref[...])
        u_b = u_ref[b]                                         # (H, N_pad)
        h_new = u_b * h_ref[b] + (1.0 - u_b) * c_b
        h_ref[b] = h_new
        # Output projection as VPU multiply + sublane reduce (a 1-row MXU
        # matmul would waste the array and pay a drain per step).
        o_b = jnp.sum(wo_ref[...] * h_new, axis=0, keepdims=True) + bo_ref[...]
        out_ref[0, b] = o_b
        # Teacher forcing: branch-free blend with the ground-truth value.
        x_ref[b] = tf * val_ref[0, b] + (1.0 - tf) * o_b


# ---------------------------------------------------------------------------
# Wrapper (glue-side padding / layout transforms + pallas_call)
# ---------------------------------------------------------------------------
def decoder_forward(params, hs, As_dense, ycl, teacher_force, *,
                    n_adjs, max_diffusion_step, n_shards=None):
    """Fused MegaCRN decoder forward.

    hs: (n_layers, B, N, H); As_dense: (n_adjs, N, N); ycl: (B, Q, N, C);
    teacher_force: (Q,) int32.  Returns (B, Q, N) predictions (out_dim == 1).
    """
    wru, bru, wc, bc, wo, bo = params
    L, Bsz, N, H = hs.shape
    # TODO(synk): the reference decoder's in-loop covariate concat is shape-
    # inconsistent with DCGRU(in_dim=h_dim) for n_layers > 1; only the runnable
    # single-layer configuration is implemented here (MegaCRN default).
    assert L == 1, "fused kernel implements the single-layer configuration"
    assert H % 8 == 0, "h_dim must be a multiple of 8 for sublane alignment"
    _, Q, _, C = ycl.shape
    K = max_diffusion_step
    M = n_adjs * K + 1
    N_pad = _round_up(N, 128)          # lane-dense nodes (128-aligned everywhere)
    F_pad = _round_up(H + C, 16)       # 16: bf16 sublane-tile alignment of term blocks
    F_tail = F_pad - H

    if n_shards is None:
        n_shards = 2 if (Bsz % 2 == 0) else 1   # use both v7x TensorCores
    assert Bsz % n_shards == 0
    B_sh = Bsz // n_shards

    hs = hs.astype(jnp.float32)
    ycl = ycl.astype(jnp.float32)

    # -- glue-side padding / layout transforms (cheap XLA ops, once per call)
    h0 = jnp.transpose(hs[0], (0, 2, 1))                               # (B, H, N)
    h0 = jnp.pad(h0, ((0, 0), (0, 0), (0, N_pad - N)))

    val = jnp.transpose(ycl[..., 0], (1, 0, 2))[:, :, None, :]         # (Q, B, 1, N)
    val = jnp.pad(val, ((0, 0), (0, 0), (0, 0), (0, N_pad - N)))

    tail = jnp.zeros((Q, Bsz, F_tail, N_pad), jnp.float32)             # [x-slot; cov; 0]
    if C > 1:
        cov = jnp.transpose(ycl[..., 1:], (1, 0, 3, 2))                # (Q, B, C-1, N)
        tail = tail.at[:, :, 1:C, :N].set(cov)

    a_t = jnp.swapaxes(As_dense.astype(jnp.float32), -1, -2)           # (n_adjs, N, N)
    a_t = jnp.pad(a_t, ((0, 0), (0, N_pad - N), (0, N_pad - N)))
    a_stack = jnp.stack([a_t, 2.0 * a_t]).astype(jnp.bfloat16)         # (2, n_adjs, Np, Np)

    kernel = functools.partial(_decoder_kernel, B=B_sh, H=H, F_pad=F_pad,
                               n_adjs=n_adjs, K=K)

    def const(arr):
        nd = arr.ndim
        return pl.BlockSpec(arr.shape, lambda s, q, tf, _nd=nd: (0,) * _nd)

    grid_spec = pltpu.PrefetchScalarGridSpec(
        num_scalar_prefetch=1,                    # teacher-forcing mask in SMEM
        grid=(n_shards, Q),
        in_specs=[
            pl.BlockSpec((1, B_sh, F_tail, N_pad), lambda s, q, tf: (q, s, 0, 0)),
            pl.BlockSpec((1, B_sh, 1, N_pad), lambda s, q, tf: (q, s, 0, 0)),
            pl.BlockSpec((B_sh, H, N_pad), lambda s, q, tf: (s, 0, 0)),
            const(a_stack),
            const(wru), const(bru), const(wc), const(bc),
            const(wo), const(bo),
        ],
        out_specs=pl.BlockSpec((1, B_sh, 1, N_pad), lambda s, q, tf: (q, s, 0, 0)),
        scratch_shapes=[
            pltpu.VMEM((B_sh, H, N_pad), jnp.float32),            # hidden state
            pltpu.VMEM((B_sh, 1, N_pad), jnp.float32),            # fed-back input
            pltpu.VMEM((B_sh, F_pad, N_pad), jnp.float32),        # gconv input z
            pltpu.VMEM((B_sh, H, N_pad), jnp.float32),            # update gate u
            pltpu.VMEM((B_sh, M * F_pad, N_pad), jnp.bfloat16),   # staged diffusion terms
        ],
    )

    out = pl.pallas_call(
        kernel,
        out_shape=jax.ShapeDtypeStruct((Q, Bsz, 1, N_pad), jnp.float32),
        grid_spec=grid_spec,
        compiler_params=pltpu.CompilerParams(
            # Batch shards are independent (parallel -> megacore on v7x);
            # the horizon axis carries state and must run sequentially.
            dimension_semantics=("parallel", "arbitrary"),
            vmem_limit_bytes=48 * 1024 * 1024,    # below v7x's 64 MiB per-TC VMEM
        ),
    )(teacher_force, tail, val, h0, a_stack, wru, bru, wc, bc, wo, bo)

    out = out[:, :, 0, :N]                                             # (Q, B, N)
    return jnp.transpose(out, (1, 0, 2))                               # (B, Q, N)


# ---------------------------------------------------------------------------
# Parameter init & adjacency glue
# ---------------------------------------------------------------------------
def _uniform(key, shape, scale, dtype=jnp.float32):
    return jax.random.uniform(key, shape, dtype, minval=-scale, maxval=scale)


def init_decoder_params(key, in_dim, h_dim, out_dim, n_adjs, max_diffusion_step):
    """DCGRU gate weights (gate- and term-fused, feature-padded) + out proj."""
    assert out_dim == 1
    M = n_adjs * max_diffusion_step + 1
    F = h_dim + in_dim                    # feature order: [h ; value ; covariates]
    F_pad = _round_up(F, 16)
    s = 1.0 / math.sqrt(M * F)
    ks = jax.random.split(key, 6)

    def fused_gate(k, gdim):
        w = jnp.zeros((gdim, M, F_pad), jnp.float32)
        w = w.at[:, :, :F].set(_uniform(k, (gdim, M, F), s))
        return w.reshape(gdim, M * F_pad).astype(jnp.bfloat16)

    wru = fused_gate(ks[0], 2 * h_dim)                 # reset+update, one deep matmul
    bru = _uniform(ks[1], (2 * h_dim, 1), s)
    wc = fused_gate(ks[2], h_dim)                      # candidate
    bc = _uniform(ks[3], (h_dim, 1), s)
    so = 1.0 / math.sqrt(h_dim)
    wo = _uniform(ks[4], (h_dim, 1), so)               # out_proj column (VPU reduce)
    bo = _uniform(ks[5], (1, 1), so)
    return (wru, bru, wc, bc, wo, bo)


def edge_index_to_dense(edge_index, n_nodes):
    """(2, |E|) edge list -> row-normalized (random-walk) dense adjacency."""
    src, dst = edge_index[0], edge_index[1]
    A = jnp.zeros((n_nodes, n_nodes), jnp.float32).at[dst, src].add(1.0)
    deg = jnp.sum(A, axis=-1, keepdims=True)
    return A / jnp.maximum(deg, 1.0)


# ---------------------------------------------------------------------------
# Demo
# ---------------------------------------------------------------------------
if __name__ == "__main__":
    # Small but representative config (MegaCRN default uses 1 recurrent layer).
    B, N, Q = 2, 16, 4               # batch, nodes, horizon (out_len)
    in_dim, h_dim, out_dim = 2, 32, 1
    n_layers, n_adjs, max_k = 1, 2, 2
    n_edges = 48
    teacher_forcing_ratio = 0.5

    key = jax.random.PRNGKey(0)
    k_hs, k_ycl, k_e0, k_e1, k_par, k_tf = jax.random.split(key, 6)

    hs = jax.random.normal(k_hs, (n_layers, B, N, h_dim), jnp.float32)
    ycl = jax.random.normal(k_ycl, (B, Q, N, in_dim), jnp.float32)

    # Adjacency as edge-index lists (2, |E|), densified glue-side.
    As_edges = [jax.random.randint(k, (2, n_edges), 0, N, jnp.int32)
                for k in (k_e0, k_e1)]
    As_dense = jnp.stack([edge_index_to_dense(e, N) for e in As_edges])   # (n_adjs, N, N)

    params = init_decoder_params(k_par, in_dim, h_dim, out_dim, n_adjs, max_k)

    # Traced int32 teacher-forcing mask (replaces the host-side random.random()
    # branch of the reference; selected in-kernel via a branch-free blend).
    teacher_force = jax.random.bernoulli(
        k_tf, teacher_forcing_ratio, (Q,)).astype(jnp.int32)

    out = decoder_forward(params, hs, As_dense, ycl, teacher_force,
                          n_adjs=n_adjs, max_diffusion_step=max_k)
    out = jax.block_until_ready(out)

    assert out.shape == (B, Q, N), out.shape
    assert bool(jnp.all(jnp.isfinite(out)))
    print("KERNEL_OK")
</pallas_src>

<mosaic_0001>
module attributes {stable_mosaic.version = 11 : i64} {
  func.func @_decoder_kernel(%arg0: i32, %arg1: i32, %arg2: memref<4xi32, #tpu.memory_space<smem>>, %arg3: memref<1x1x16x128xf32, #tpu.memory_space<vmem>>, %arg4: memref<1x1x1x128xf32, #tpu.memory_space<vmem>>, %arg5: memref<1x32x128xf32, #tpu.memory_space<vmem>>, %arg6: memref<2x2x128x128xbf16, #tpu.memory_space<vmem>>, %arg7: memref<64x240xbf16, #tpu.memory_space<vmem>>, %arg8: memref<64x1xf32, #tpu.memory_space<vmem>>, %arg9: memref<32x240xbf16, #tpu.memory_space<vmem>>, %arg10: memref<32x1xf32, #tpu.memory_space<vmem>>, %arg11: memref<32x1xf32, #tpu.memory_space<vmem>>, %arg12: memref<1x1xf32, #tpu.memory_space<vmem>>, %arg13: memref<1x1x1x128xf32, #tpu.memory_space<vmem>>, %arg14: memref<1x32x128xf32, #tpu.memory_space<vmem>>, %arg15: memref<1x1x128xf32, #tpu.memory_space<vmem>>, %arg16: memref<1x48x128xf32, #tpu.memory_space<vmem>>, %arg17: memref<1x32x128xf32, #tpu.memory_space<vmem>>, %arg18: memref<1x240x128xbf16, #tpu.memory_space<vmem>>) attributes {dimension_semantics = [#tpu.dimension_semantics<parallel>, #tpu.dimension_semantics<arbitrary>], iteration_bounds = array<i64: 2, 4>, scalar_prefetch = 1 : i64, scratch_operands = 5 : i64, tpu.core_type = #tpu.core_type<tc>, window_params = [{transform_indices = @transform_0, window_bounds = array<i64: 1, 1, 16, 128>}, {transform_indices = @transform_1, window_bounds = array<i64: 1, 1, 1, 128>}, {transform_indices = @transform_2, window_bounds = array<i64: 1, 32, 128>}, {pipeline_mode = #tpu.pipeline_mode<synchronous>, transform_indices = @transform_3, window_bounds = array<i64: 2, 2, 128, 128>}, {pipeline_mode = #tpu.pipeline_mode<synchronous>, transform_indices = @transform_4, window_bounds = array<i64: 64, 240>}, {pipeline_mode = #tpu.pipeline_mode<synchronous>, transform_indices = @transform_5, window_bounds = array<i64: 64, 1>}, {pipeline_mode = #tpu.pipeline_mode<synchronous>, transform_indices = @transform_6, window_bounds = array<i64: 32, 240>}, {pipeline_mode = #tpu.pipeline_mode<synchronous>, transform_indices = @transform_7, window_bounds = array<i64: 32, 1>}, {pipeline_mode = #tpu.pipeline_mode<synchronous>, transform_indices = @transform_8, window_bounds = array<i64: 32, 1>}, {pipeline_mode = #tpu.pipeline_mode<synchronous>, transform_indices = @transform_9, window_bounds = array<i64: 1, 1>}, {transform_indices = @transform_10, window_bounds = array<i64: 1, 1, 1, 128>}]} {
    %c0_i32 = arith.constant 0 : i32
    %0 = arith.cmpi eq, %arg1, %c0_i32 : i32
    %1 = arith.extui %0 : i1 to i32
    %c0_i32_0 = arith.constant 0 : i32
    %2 = arith.cmpi ne, %1, %c0_i32_0 : i32
    scf.if %2 {
      %c0_140 = arith.constant 0 : index
      %c0_141 = arith.constant 0 : index
      %c0_142 = arith.constant 0 : index
      %151 = vector.load %arg5[%c0_140, %c0_141, %c0_142] : memref<1x32x128xf32, #tpu.memory_space<vmem>>, vector<1x32x128xf32>
      %c0_143 = arith.constant 0 : index
      %c0_144 = arith.constant 0 : index
      %c0_145 = arith.constant 0 : index
      %152 = vector.load %arg14[%c0_143, %c0_144, %c0_145] : memref<1x32x128xf32, #tpu.memory_space<vmem>>, vector<1x32x128xf32>
      tpu.vector_store %arg14[%c0_143, %c0_144, %c0_145], %151 {strides = array<i32>} : memref<1x32x128xf32, #tpu.memory_space<vmem>>, vector<1x32x128xf32>,
      %cst_146 = arith.constant 0.000000e+00 : f32
      %153 = vector.broadcast %cst_146 : f32 to vector<1x1x128xf32>
      %c0_147 = arith.constant 0 : index
      %c0_148 = arith.constant 0 : index
      %c0_149 = arith.constant 0 : index
      %154 = vector.load %arg15[%c0_147, %c0_148, %c0_149] : memref<1x1x128xf32, #tpu.memory_space<vmem>>, vector<1x1x128xf32>
      tpu.vector_store %arg15[%c0_147, %c0_148, %c0_149], %153 {strides = array<i32>} : memref<1x1x128xf32, #tpu.memory_space<vmem>>, vector<1x1x128xf32>,
    } else {
    }
    %c0 = arith.constant 0 : index
    %c0_1 = arith.constant 0 : index
    %c0_2 = arith.constant 0 : index
    %c0_3 = arith.constant 0 : index
    %3 = vector.load %arg3[%c0, %c0_1, %c0_2, %c0_3] : memref<1x1x16x128xf32, #tpu.memory_space<vmem>>, vector<1x1x16x128xf32>
    %4 = vector.shape_cast %3 : vector<1x1x16x128xf32> to vector<1x16x128xf32>
    %5 = tpu.iota {dimensions = array<i32: 1>} : vector<1x16x128xi32>
    %c0_i32_4 = arith.constant 0 : i32
    %6 = vector.broadcast %c0_i32_4 : i32 to vector<1x16x128xi32>
    %7 = arith.cmpi eq, %5, %6 : vector<1x16x128xi32>
    %c0_5 = arith.constant 0 : index
    %c0_6 = arith.constant 0 : index
    %c0_7 = arith.constant 0 : index
    %8 = vector.load %arg15[%c0_5, %c0_6, %c0_7] : memref<1x1x128xf32, #tpu.memory_space<vmem>>, vector<1x1x128xf32>
    %9 = vector.shape_cast %8 : vector<1x1x128xf32> to vector<1x1x128xf32>
    %10 = vector.broadcast %9 : vector<1x1x128xf32> to vector<1x16x128xf32>
    %11 = arith.select %7, %10, %4 : vector<1x16x128xi1>, vector<1x16x128xf32>
    %c0_8 = arith.constant 0 : index
    %c0_9 = arith.constant 0 : index
    %c0_10 = arith.constant 0 : index
    %12 = vector.load %arg14[%c0_8, %c0_9, %c0_10] : memref<1x32x128xf32, #tpu.memory_space<vmem>>, vector<1x32x128xf32>
    %c0_11 = arith.constant 0 : index
    %c0_12 = arith.constant 0 : index
    %c0_13 = arith.constant 0 : index
    %13 = vector.load %arg16[%c0_11, %c0_12, %c0_13] : memref<1x48x128xf32, #tpu.memory_space<vmem>>, vector<1x32x128xf32>
    tpu.vector_store %arg16[%c0_11, %c0_12, %c0_13], %12 {strides = array<i32>} : memref<1x48x128xf32, #tpu.memory_space<vmem>>, vector<1x32x128xf32>,
    %c0_14 = arith.constant 0 : index
    %c32 = arith.constant 32 : index
    %c0_15 = arith.constant 0 : index
    %14 = vector.load %arg16[%c0_14, %c32, %c0_15] : memref<1x48x128xf32, #tpu.memory_space<vmem>>, vector<1x16x128xf32>
    tpu.vector_store %arg16[%c0_14, %c32, %c0_15], %11 {strides = array<i32>} : memref<1x48x128xf32, #tpu.memory_space<vmem>>, vector<1x16x128xf32>,
    %c0_16 = arith.constant 0 : index
    %c0_17 = arith.constant 0 : index
    %c0_18 = arith.constant 0 : index
    %15 = vector.load %arg16[%c0_16, %c0_17, %c0_18] : memref<1x48x128xf32, #tpu.memory_space<vmem>>, vector<1x48x128xf32>
    %16 = arith.truncf %15 : vector<1x48x128xf32> to vector<1x48x128xbf16>
    %c0_19 = arith.constant 0 : index
    %c0_20 = arith.constant 0 : index
    %c0_21 = arith.constant 0 : index
    %17 = vector.load %arg18[%c0_19, %c0_20, %c0_21] : memref<1x240x128xbf16, #tpu.memory_space<vmem>>, vector<1x48x128xbf16>
    tpu.vector_store %arg18[%c0_19, %c0_20, %c0_21], %16 {strides = array<i32>} : memref<1x240x128xbf16, #tpu.memory_space<vmem>>, vector<1x48x128xbf16>,
    %c0_22 = arith.constant 0 : index
    %c0_23 = arith.constant 0 : index
    %c0_24 = arith.constant 0 : index
    %c0_25 = arith.constant 0 : index
    %18 = vector.load %arg6[%c0_22, %c0_23, %c0_24, %c0_25] : memref<2x2x128x128xbf16, #tpu.memory_space<vmem>>, vector<1x1x128x128xbf16>
    %19 = vector.shape_cast %18 : vector<1x1x128x128xbf16> to vector<128x128xbf16>
    %c1 = arith.constant 1 : index
    %c0_26 = arith.constant 0 : index
    %c0_27 = arith.constant 0 : index
    %c0_28 = arith.constant 0 : index
    %20 = vector.load %arg6[%c1, %c0_26, %c0_27, %c0_28] : memref<2x2x128x128xbf16, #tpu.memory_space<vmem>>, vector<1x1x128x128xbf16>
    %21 = vector.shape_cast %20 : vector<1x1x128x128xbf16> to vector<128x128xbf16>
    %22 = vector.shape_cast %16 : vector<1x48x128xbf16> to vector<48x128xbf16>
    %cst = arith.constant dense<0.000000e+00> : vector<48x128xf32>
    %23 = tpu.matmul %22, %19, %cst {dimension_numbers = #tpu.dot_dimension_numbers<[1], [0], [0], [1], [0, 0, 1, 1], [], []>} : vector<48x128xbf16>, vector<128x128xbf16>, vector<48x128xf32> -> vector<48x128xf32>
    %24 = vector.shape_cast %23 : vector<48x128xf32> to vector<1x48x128xf32>
    %25 = arith.truncf %24 : vector<1x48x128xf32> to vector<1x48x128xbf16>
    %c0_29 = arith.constant 0 : index
    %c48 = arith.constant 48 : index
    %c0_30 = arith.constant 0 : index
    %26 = vector.load %arg18[%c0_29, %c48, %c0_30] : memref<1x240x128xbf16, #tpu.memory_space<vmem>>, vector<1x48x128xbf16>
    tpu.vector_store %arg18[%c0_29, %c48, %c0_30], %25 {strides = array<i32>} : memref<1x240x128xbf16, #tpu.memory_space<vmem>>, vector<1x48x128xbf16>,
    %27 = vector.shape_cast %25 : vector<1x48x128xbf16> to vector<48x128xbf16>
    %cst_31 = arith.constant dense<0.000000e+00> : vector<48x128xf32>
    %28 = tpu.matmul %27, %21, %cst_31 {dimension_numbers = #tpu.dot_dimension_numbers<[1], [0], [0], [1], [0, 0, 1, 1], [], []>} : vector<48x128xbf16>, vector<128x128xbf16>, vector<48x128xf32> -> vector<48x128xf32>
    %29 = vector.shape_cast %28 : vector<48x128xf32> to vector<1x48x128xf32>
    %30 = arith.subf %29, %15 : vector<1x48x128xf32>
    %31 = arith.truncf %30 : vector<1x48x128xf32> to vector<1x48x128xbf16>
    %c0_32 = arith.constant 0 : index
    %c96 = arith.constant 96 : index
    %c0_33 = arith.constant 0 : index
    %32 = vector.load %arg18[%c0_32, %c96, %c0_33] : memref<1x240x128xbf16, #tpu.memory_space<vmem>>, vector<1x48x128xbf16>
    tpu.vector_store %arg18[%c0_32, %c96, %c0_33], %31 {strides = array<i32>} : memref<1x240x128xbf16, #tpu.memory_space<vmem>>, vector<1x48x128xbf16>,
    %c0_34 = arith.constant 0 : index
    %c1_35 = arith.constant 1 : index
    %c0_36 = arith.constant 0 : index
    %c0_37 = arith.constant 0 : index
    %33 = vector.load %arg6[%c0_34, %c1_35, %c0_36, %c0_37] : memref<2x2x128x128xbf16, #tpu.memory_space<vmem>>, vector<1x1x128x128xbf16>
    %34 = vector.shape_cast %33 : vector<1x1x128x128xbf16> to vector<128x128xbf16>
    %c1_38 = arith.constant 1 : index
    %c1_39 = arith.constant 1 : index
    %c0_40 = arith.constant 0 : index
    %c0_41 = arith.constant 0 : index
    %35 = vector.load %arg6[%c1_38, %c1_39, %c0_40, %c0_41] : memref<2x2x128x128xbf16, #tpu.memory_space<vmem>>, vector<1x1x128x128xbf16>
    %36 = vector.shape_cast %35 : vector<1x1x128x128xbf16> to vector<128x128xbf16>
    %37 = vector.shape_cast %16 : vector<1x48x128xbf16> to vector<48x128xbf16>
    %cst_42 = arith.constant dense<0.000000e+00> : vector<48x128xf32>
    %38 = tpu.matmul %37, %34, %cst_42 {dimension_numbers = #tpu.dot_dimension_numbers<[1], [0], [0], [1], [0, 0, 1, 1], [], []>} : vector<48x128xbf16>, vector<128x128xbf16>, vector<48x128xf32> -> vector<48x128xf32>
    %39 = vector.shape_cast %38 : vector<48x128xf32> to vector<1x48x128xf32>
    %40 = arith.truncf %39 : vector<1x48x128xf32> to vector<1x48x128xbf16>
    %c0_43 = arith.constant 0 : index
    %c144 = arith.constant 144 : index
    %c0_44 = arith.constant 0 : index
    %41 = vector.load %arg18[%c0_43, %c144, %c0_44] : memref<1x240x128xbf16, #tpu.memory_space<vmem>>, vector<1x48x128xbf16>
    tpu.vector_store %arg18[%c0_43, %c144, %c0_44], %40 {strides = array<i32>} : memref<1x240x128xbf16, #tpu.memory_space<vmem>>, vector<1x48x128xbf16>,
    %42 = vector.shape_cast %40 : vector<1x48x128xbf16> to vector<48x128xbf16>
    %cst_45 = arith.constant dense<0.000000e+00> : vector<48x128xf32>
    %43 = tpu.matmul %42, %36, %cst_45 {dimension_numbers = #tpu.dot_dimension_numbers<[1], [0], [0], [1], [0, 0, 1, 1], [], []>} : vector<48x128xbf16>, vector<128x128xbf16>, vector<48x128xf32> -> vector<48x128xf32>
    %44 = vector.shape_cast %43 : vector<48x128xf32> to vector<1x48x128xf32>
    %45 = arith.subf %44, %15 : vector<1x48x128xf32>
    %46 = arith.truncf %45 : vector<1x48x128xf32> to vector<1x48x128xbf16>
    %c0_46 = arith.constant 0 : index
    %c192 = arith.constant 192 : index
    %c0_47 = arith.constant 0 : index
    %47 = vector.load %arg18[%c0_46, %c192, %c0_47] : memref<1x240x128xbf16, #tpu.memory_space<vmem>>, vector<1x48x128xbf16>
    tpu.vector_store %arg18[%c0_46, %c192, %c0_47], %46 {strides = array<i32>} : memref<1x240x128xbf16, #tpu.memory_space<vmem>>, vector<1x48x128xbf16>,
    %c0_48 = arith.constant 0 : index
    %c0_49 = arith.constant 0 : index
    %48 = vector.load %arg7[%c0_48, %c0_49] : memref<64x240xbf16, #tpu.memory_space<vmem>>, vector<64x240xbf16>
    %c0_50 = arith.constant 0 : index
    %c0_51 = arith.constant 0 : index
    %c0_52 = arith.constant 0 : index
    %49 = vector.load %arg18[%c0_50, %c0_51, %c0_52] : memref<1x240x128xbf16, #tpu.memory_space<vmem>>, vector<1x240x128xbf16>
    %50 = vector.shape_cast %49 : vector<1x240x128xbf16> to vector<240x128xbf16>
    %cst_53 = arith.constant dense<0.000000e+00> : vector<64x128xf32>
    %51 = tpu.matmul %48, %50, %cst_53 {dimension_numbers = #tpu.dot_dimension_numbers<[1], [0], [0], [1], [0, 0, 1, 1], [], []>} : vector<64x240xbf16>, vector<240x128xbf16>, vector<64x128xf32> -> vector<64x128xf32>
    %c0_54 = arith.constant 0 : index
    %c0_55 = arith.constant 0 : index
    %52 = vector.load %arg8[%c0_54, %c0_55] : memref<64x1xf32, #tpu.memory_space<vmem>>, vector<64x1xf32>
    %53 = vector.broadcast %52 : vector<64x1xf32> to vector<64x128xf32>
    %54 = arith.addf %51, %53 : vector<64x128xf32>
    %55 = arith.negf %54 : vector<64x128xf32>
    %56 = math.exp %55 : vector<64x128xf32>
    %cst_56 = arith.constant 1.000000e+00 : f32
    %57 = vector.broadcast %cst_56 : f32 to vector<64x128xf32>
    %58 = arith.addf %57, %56 : vector<64x128xf32>
    %59 = arith.divf %57, %58 : vector<64x128xf32>
    %60 = vector.extract_strided_slice %59 {offsets = [32, 0], sizes = [32, 128], strides = [1, 1]} : vector<64x128xf32> to vector<32x128xf32>
    %c0_57 = arith.constant 0 : index
    %c0_58 = arith.constant 0 : index
    %c0_59 = arith.constant 0 : index
    %61 = vector.load %arg17[%c0_57, %c0_58, %c0_59] : memref<1x32x128xf32, #tpu.memory_space<vmem>>, vector<1x32x128xf32>
    %62 = vector.shape_cast %61 : vector<1x32x128xf32> to vector<32x128xf32>
    %63 = vector.shape_cast %60 : vector<32x128xf32> to vector<1x32x128xf32>
    tpu.vector_store %arg17[%c0_57, %c0_58, %c0_59], %63 {strides = array<i32>} : memref<1x32x128xf32, #tpu.memory_space<vmem>>, vector<1x32x128xf32>,
    %64 = vector.extract_strided_slice %59 {offsets = [0, 0], sizes = [32, 128], strides = [1, 1]} : vector<64x128xf32> to vector<32x128xf32>
    %c0_60 = arith.constant 0 : index
    %c0_61 = arith.constant 0 : index
    %c0_62 = arith.constant 0 : index
    %65 = vector.load %arg14[%c0_60, %c0_61, %c0_62] : memref<1x32x128xf32, #tpu.memory_space<vmem>>, vector<1x32x128xf32>
    %66 = vector.shape_cast %65 : vector<1x32x128xf32> to vector<32x128xf32>
    %67 = arith.mulf %64, %66 : vector<32x128xf32>
    %c0_63 = arith.constant 0 : index
    %c0_64 = arith.constant 0 : index
    %c0_65 = arith.constant 0 : index
    %68 = vector.load %arg16[%c0_63, %c0_64, %c0_65] : memref<1x48x128xf32, #tpu.memory_space<vmem>>, vector<1x32x128xf32>
    %69 = vector.shape_cast %68 : vector<1x32x128xf32> to vector<32x128xf32>
    %70 = vector.shape_cast %67 : vector<32x128xf32> to vector<1x32x128xf32>
    tpu.vector_store %arg16[%c0_63, %c0_64, %c0_65], %70 {strides = array<i32>} : memref<1x48x128xf32, #tpu.memory_space<vmem>>, vector<1x32x128xf32>,
    %c0_66 = arith.constant 0 : index
    %c0_67 = arith.constant 0 : index
    %c0_68 = arith.constant 0 : index
    %71 = vector.load %arg16[%c0_66, %c0_67, %c0_68] : memref<1x48x128xf32, #tpu.memory_space<vmem>>, vector<1x48x128xf32>
    %72 = arith.truncf %71 : vector<1x48x128xf32> to vector<1x48x128xbf16>
    %c0_69 = arith.constant 0 : index
    %c0_70 = arith.constant 0 : index
    %c0_71 = arith.constant 0 : index
    %73 = vector.load %arg18[%c0_69, %c0_70, %c0_71] : memref<1x240x128xbf16, #tpu.memory_space<vmem>>, vector<1x48x128xbf16>
    tpu.vector_store %arg18[%c0_69, %c0_70, %c0_71], %72 {strides = array<i32>} : memref<1x240x128xbf16, #tpu.memory_space<vmem>>, vector<1x48x128xbf16>,
    %c0_72 = arith.constant 0 : index
    %c0_73 = arith.constant 0 : index
    %c0_74 = arith.constant 0 : index
    %c0_75 = arith.constant 0 : index
    %74 = vector.load %arg6[%c0_72, %c0_73, %c0_74, %c0_75] : memref<2x2x128x128xbf16, #tpu.memory_space<vmem>>, vector<1x1x128x128xbf16>
    %75 = vector.shape_cast %74 : vector<1x1x128x128xbf16> to vector<128x128xbf16>
    %c1_76 = arith.constant 1 : index
    %c0_77 = arith.constant 0 : index
    %c0_78 = arith.constant 0 : index
    %c0_79 = arith.constant 0 : index
    %76 = vector.load %arg6[%c1_76, %c0_77, %c0_78, %c0_79] : memref<2x2x128x128xbf16, #tpu.memory_space<vmem>>, vector<1x1x128x128xbf16>
    %77 = vector.shape_cast %76 : vector<1x1x128x128xbf16> to vector<128x128xbf16>
    %78 = vector.shape_cast %72 : vector<1x48x128xbf16> to vector<48x128xbf16>
    %cst_80 = arith.constant dense<0.000000e+00> : vector<48x128xf32>
    %79 = tpu.matmul %78, %75, %cst_80 {dimension_numbers = #tpu.dot_dimension_numbers<[1], [0], [0], [1], [0, 0, 1, 1], [], []>} : vector<48x128xbf16>, vector<128x128xbf16>, vector<48x128xf32> -> vector<48x128xf32>
    %80 = vector.shape_cast %79 : vector<48x128xf32> to vector<1x48x128xf32>
    %81 = arith.truncf %80 : vector<1x48x128xf32> to vector<1x48x128xbf16>
    %c0_81 = arith.constant 0 : index
    %c48_82 = arith.constant 48 : index
    %c0_83 = arith.constant 0 : index
    %82 = vector.load %arg18[%c0_81, %c48_82, %c0_83] : memref<1x240x128xbf16, #tpu.memory_space<vmem>>, vector<1x48x128xbf16>
    tpu.vector_store %arg18[%c0_81, %c48_82, %c0_83], %81 {strides = array<i32>} : memref<1x240x128xbf16, #tpu.memory_space<vmem>>, vector<1x48x128xbf16>,
    %83 = vector.shape_cast %81 : vector<1x48x128xbf16> to vector<48x128xbf16>
    %cst_84 = arith.constant dense<0.000000e+00> : vector<48x128xf32>
    %84 = tpu.matmul %83, %77, %cst_84 {dimension_numbers = #tpu.dot_dimension_numbers<[1], [0], [0], [1], [0, 0, 1, 1], [], []>} : vector<48x128xbf16>, vector<128x128xbf16>, vector<48x128xf32> -> vector<48x128xf32>
    %85 = vector.shape_cast %84 : vector<48x128xf32> to vector<1x48x128xf32>
    %86 = arith.subf %85, %71 : vector<1x48x128xf32>
    %87 = arith.truncf %86 : vector<1x48x128xf32> to vector<1x48x128xbf16>
    %c0_85 = arith.constant 0 : index
    %c96_86 = arith.constant 96 : index
    %c0_87 = arith.constant 0 : index
    %88 = vector.load %arg18[%c0_85, %c96_86, %c0_87] : memref<1x240x128xbf16, #tpu.memory_space<vmem>>, vector<1x48x128xbf16>
    tpu.vector_store %arg18[%c0_85, %c96_86, %c0_87], %87 {strides = array<i32>} : memref<1x240x128xbf16, #tpu.memory_space<vmem>>, vector<1x48x128xbf16>,
    %c0_88 = arith.constant 0 : index
    %c1_89 = arith.constant 1 : index
    %c0_90 = arith.constant 0 : index
    %c0_91 = arith.constant 0 : index
    %89 = vector.load %arg6[%c0_88, %c1_89, %c0_90, %c0_91] : memref<2x2x128x128xbf16, #tpu.memory_space<vmem>>, vector<1x1x128x128xbf16>
    %90 = vector.shape_cast %89 : vector<1x1x128x128xbf16> to vector<128x128xbf16>
    %c1_92 = arith.constant 1 : index
    %c1_93 = arith.constant 1 : index
    %c0_94 = arith.constant 0 : index
    %c0_95 = arith.constant 0 : index
    %91 = vector.load %arg6[%c1_92, %c1_93, %c0_94, %c0_95] : memref<2x2x128x128xbf16, #tpu.memory_space<vmem>>, vector<1x1x128x128xbf16>
    %92 = vector.shape_cast %91 : vector<1x1x128x128xbf16> to vector<128x128xbf16>
    %93 = vector.shape_cast %72 : vector<1x48x128xbf16> to vector<48x128xbf16>
    %cst_96 = arith.constant dense<0.000000e+00> : vector<48x128xf32>
    %94 = tpu.matmul %93, %90, %cst_96 {dimension_numbers = #tpu.dot_dimension_numbers<[1], [0], [0], [1], [0, 0, 1, 1], [], []>} : vector<48x128xbf16>, vector<128x128xbf16>, vector<48x128xf32> -> vector<48x128xf32>
    %95 = vector.shape_cast %94 : vector<48x128xf32> to vector<1x48x128xf32>
    %96 = arith.truncf %95 : vector<1x48x128xf32> to vector<1x48x128xbf16>
    %c0_97 = arith.constant 0 : index
    %c144_98 = arith.constant 144 : index
    %c0_99 = arith.constant 0 : index
    %97 = vector.load %arg18[%c0_97, %c144_98, %c0_99] : memref<1x240x128xbf16, #tpu.memory_space<vmem>>, vector<1x48x128xbf16>
    tpu.vector_store %arg18[%c0_97, %c144_98, %c0_99], %96 {strides = array<i32>} : memref<1x240x128xbf16, #tpu.memory_space<vmem>>, vector<1x48x128xbf16>,
    %98 = vector.shape_cast %96 : vector<1x48x128xbf16> to vector<48x128xbf16>
    %cst_100 = arith.constant dense<0.000000e+00> : vector<48x128xf32>
    %99 = tpu.matmul %98, %92, %cst_100 {dimension_numbers = #tpu.dot_dimension_numbers<[1], [0], [0], [1], [0, 0, 1, 1], [], []>} : vector<48x128xbf16>, vector<128x128xbf16>, vector<48x128xf32> -> vector<48x128xf32>
    %100 = vector.shape_cast %99 : vector<48x128xf32> to vector<1x48x128xf32>
    %101 = arith.subf %100, %71 : vector<1x48x128xf32>
    %102 = arith.truncf %101 : vector<1x48x128xf32> to vector<1x48x128xbf16>
    %c0_101 = arith.constant 0 : index
    %c192_102 = arith.constant 192 : index
    %c0_103 = arith.constant 0 : index
    %103 = vector.load %arg18[%c0_101, %c192_102, %c0_103] : memref<1x240x128xbf16, #tpu.memory_space<vmem>>, vector<1x48x128xbf16>
    tpu.vector_store %arg18[%c0_101, %c192_102, %c0_103], %102 {strides = array<i32>} : memref<1x240x128xbf16, #tpu.memory_space<vmem>>, vector<1x48x128xbf16>,
    %104 = arith.index_cast %arg1 : i32 to index
    %105 = memref.load %arg2[%104] : memref<4xi32, #tpu.memory_space<smem>>
    %c0_i32_104 = arith.constant 0 : i32
    %106 = arith.cmpi sgt, %105, %c0_i32_104 : i32
    %107 = arith.extui %106 : i1 to i32
    %108 = arith.sitofp %107 : i32 to f32
    %c0_105 = arith.constant 0 : index
    %c0_106 = arith.constant 0 : index
    %109 = vector.load %arg9[%c0_105, %c0_106] : memref<32x240xbf16, #tpu.memory_space<vmem>>, vector<32x240xbf16>
    %c0_107 = arith.constant 0 : index
    %c0_108 = arith.constant 0 : index
    %c0_109 = arith.constant 0 : index
    %110 = vector.load %arg18[%c0_107, %c0_108, %c0_109] : memref<1x240x128xbf16, #tpu.memory_space<vmem>>, vector<1x240x128xbf16>
    %111 = vector.shape_cast %110 : vector<1x240x128xbf16> to vector<240x128xbf16>
    %cst_110 = arith.constant dense<0.000000e+00> : vector<32x128xf32>
    %112 = tpu.matmul %109, %111, %cst_110 {dimension_numbers = #tpu.dot_dimension_numbers<[1], [0], [0], [1], [0, 0, 1, 1], [], []>} : vector<32x240xbf16>, vector<240x128xbf16>, vector<32x128xf32> -> vector<32x128xf32>
    %c0_111 = arith.constant 0 : index
    %c0_112 = arith.constant 0 : index
    %113 = vector.load %arg10[%c0_111, %c0_112] : memref<32x1xf32, #tpu.memory_space<vmem>>, vector<32x1xf32>
    %114 = vector.broadcast %113 : vector<32x1xf32> to vector<32x128xf32>
    %115 = arith.addf %112, %114 : vector<32x128xf32>
    %116 = math.tanh %115 : vector<32x128xf32>
    %c0_113 = arith.constant 0 : index
    %c0_114 = arith.constant 0 : index
    %c0_115 = arith.constant 0 : index
    %117 = vector.load %arg17[%c0_113, %c0_114, %c0_115] : memref<1x32x128xf32, #tpu.memory_space<vmem>>, vector<1x32x128xf32>
    %118 = vector.shape_cast %117 : vector<1x32x128xf32> to vector<32x128xf32>
    %c0_116 = arith.constant 0 : index
    %c0_117 = arith.constant 0 : index
    %c0_118 = arith.constant 0 : index
    %119 = vector.load %arg14[%c0_116, %c0_117, %c0_118] : memref<1x32x128xf32, #tpu.memory_space<vmem>>, vector<1x32x128xf32>
    %120 = vector.shape_cast %119 : vector<1x32x128xf32> to vector<32x128xf32>
    %121 = arith.mulf %118, %120 : vector<32x128xf32>
    %cst_119 = arith.constant 1.000000e+00 : f32
    %122 = vector.broadcast %cst_119 : f32 to vector<32x128xf32>
    %123 = arith.subf %122, %118 : vector<32x128xf32>
    %124 = arith.mulf %123, %116 : vector<32x128xf32>
    %125 = arith.addf %121, %124 : vector<32x128xf32>
    %c0_120 = arith.constant 0 : index
    %c0_121 = arith.constant 0 : index
    %c0_122 = arith.constant 0 : index
    %126 = vector.load %arg14[%c0_120, %c0_121, %c0_122] : memref<1x32x128xf32, #tpu.memory_space<vmem>>, vector<1x32x128xf32>
    %127 = vector.shape_cast %126 : vector<1x32x128xf32> to vector<32x128xf32>
    %128 = vector.shape_cast %125 : vector<32x128xf32> to vector<1x32x128xf32>
    tpu.vector_store %arg14[%c0_120, %c0_121, %c0_122], %128 {strides = array<i32>} : memref<1x32x128xf32, #tpu.memory_space<vmem>>, vector<1x32x128xf32>,
    %c0_123 = arith.constant 0 : index
    %c0_124 = arith.constant 0 : index
    %129 = vector.load %arg11[%c0_123, %c0_124] : memref<32x1xf32, #tpu.memory_space<vmem>>, vector<32x1xf32>
    %130 = vector.broadcast %129 : vector<32x1xf32> to vector<32x128xf32>
    %131 = arith.mulf %130, %125 : vector<32x128xf32>
    %cst_125 = arith.constant dense<0.000000e+00> : vector<128xf32>
    %132 = vector.multi_reduction <add>, %131, %cst_125 [0] : vector<32x128xf32> to vector<128xf32>
    %133 = vector.shape_cast %132 : vector<128xf32> to vector<1x128xf32>
    %c0_126 = arith.constant 0 : index
    %c0_127 = arith.constant 0 : index
    %134 = vector.load %arg12[%c0_126, %c0_127] : memref<1x1xf32, #tpu.memory_space<vmem>>, vector<1x1xf32>
    %135 = vector.broadcast %134 : vector<1x1xf32> to vector<1x128xf32>
    %136 = arith.addf %133, %135 : vector<1x128xf32>
    %c0_128 = arith.constant 0 : index
    %c0_129 = arith.constant 0 : index
    %c0_130 = arith.constant 0 : index
    %c0_131 = arith.constant 0 : index
    %137 = vector.load %arg13[%c0_128, %c0_129, %c0_130, %c0_131] : memref<1x1x1x128xf32, #tpu.memory_space<vmem>>, vector<1x1x1x128xf32>
    %138 = vector.shape_cast %137 : vector<1x1x1x128xf32> to vector<1x128xf32>
    %139 = vector.shape_cast %136 : vector<1x128xf32> to vector<1x1x1x128xf32>
    tpu.vector_store %arg13[%c0_128, %c0_129, %c0_130, %c0_131], %139 {strides = array<i32>} : memref<1x1x1x128xf32, #tpu.memory_space<vmem>>, vector<1x1x1x128xf32>,
    %c0_132 = arith.constant 0 : index
    %c0_133 = arith.constant 0 : index
    %c0_134 = arith.constant 0 : index
    %c0_135 = arith.constant 0 : index
    %140 = vector.load %arg4[%c0_132, %c0_133, %c0_134, %c0_135] : memref<1x1x1x128xf32, #tpu.memory_space<vmem>>, vector<1x1x1x128xf32>
    %141 = vector.shape_cast %140 : vector<1x1x1x128xf32> to vector<1x128xf32>
    %142 = vector.broadcast %108 : f32 to vector<1x128xf32>
    %143 = arith.mulf %142, %141 : vector<1x128xf32>
    %cst_136 = arith.constant 1.000000e+00 : f32
    %144 = arith.subf %cst_136, %108 : f32
    %145 = vector.broadcast %144 : f32 to vector<1x128xf32>
    %146 = arith.mulf %145, %136 : vector<1x128xf32>
    %147 = arith.addf %143, %146 : vector<1x128xf32>
    %c0_137 = arith.constant 0 : index
    %c0_138 = arith.constant 0 : index
    %c0_139 = arith.constant 0 : index
    %148 = vector.load %arg15[%c0_137, %c0_138, %c0_139] : memref<1x1x128xf32, #tpu.memory_space<vmem>>, vector<1x1x128xf32>
    %149 = vector.shape_cast %148 : vector<1x1x128xf32> to vector<1x128xf32>
    %150 = vector.shape_cast %147 : vector<1x128xf32> to vector<1x1x128xf32>
    tpu.vector_store %arg15[%c0_137, %c0_138, %c0_139], %150 {strides = array<i32>} : memref<1x1x128xf32, #tpu.memory_space<vmem>>, vector<1x1x128xf32>,
    return
  }
  func.func @transform_0(%arg0: i32, %arg1: i32, %arg2: memref<4xi32, #tpu.memory_space<smem>>) -> (i32, i32, i32, i32) {
    %c0_i32 = arith.constant 0 : i32
    %c0_i32_0 = arith.constant 0 : i32
    %c0_i32_1 = arith.constant 0 : i32
    return %arg1, %arg0, %c0_i32, %c0_i32_0 : i32, i32, i32, i32
  }
  func.func @transform_1(%arg0: i32, %arg1: i32, %arg2: memref<4xi32, #tpu.memory_space<smem>>) -> (i32, i32, i32, i32) {
    %c0_i32 = arith.constant 0 : i32
    %c0_i32_0 = arith.constant 0 : i32
    %c0_i32_1 = arith.constant 0 : i32
    return %arg1, %arg0, %c0_i32, %c0_i32_0 : i32, i32, i32, i32
  }
  func.func @transform_2(%arg0: i32, %arg1: i32, %arg2: memref<4xi32, #tpu.memory_space<smem>>) -> (i32, i32, i32) {
    %c0_i32 = arith.constant 0 : i32
    %c0_i32_0 = arith.constant 0 : i32
    %c0_i32_1 = arith.constant 0 : i32
    return %arg0, %c0_i32, %c0_i32_0 : i32, i32, i32
  }
  func.func @transform_3(%arg0: i32, %arg1: i32, %arg2: memref<4xi32, #tpu.memory_space<smem>>) -> (i32, i32, i32, i32) {
    %c0_i32 = arith.constant 0 : i32
    %c0_i32_0 = arith.constant 0 : i32
    %c0_i32_1 = arith.constant 0 : i32
    %c0_i32_2 = arith.constant 0 : i32
    %c0_i32_3 = arith.constant 0 : i32
    return %c0_i32, %c0_i32_0, %c0_i32_1, %c0_i32_2 : i32, i32, i32, i32
  }
  func.func @transform_4(%arg0: i32, %arg1: i32, %arg2: memref<4xi32, #tpu.memory_space<smem>>) -> (i32, i32) {
    %c0_i32 = arith.constant 0 : i32
    %c0_i32_0 = arith.constant 0 : i32
    %c0_i32_1 = arith.constant 0 : i32
    return %c0_i32, %c0_i32_0 : i32, i32
  }
  func.func @transform_5(%arg0: i32, %arg1: i32, %arg2: memref<4xi32, #tpu.memory_space<smem>>) -> (i32, i32) {
    %c0_i32 = arith.constant 0 : i32
    %c0_i32_0 = arith.constant 0 : i32
    %c0_i32_1 = arith.constant 0 : i32
    return %c0_i32, %c0_i32_0 : i32, i32
  }
  func.func @transform_6(%arg0: i32, %arg1: i32, %arg2: memref<4xi32, #tpu.memory_space<smem>>) -> (i32, i32) {
    %c0_i32 = arith.constant 0 : i32
    %c0_i32_0 = arith.constant 0 : i32
    %c0_i32_1 = arith.constant 0 : i32
    return %c0_i32, %c0_i32_0 : i32, i32
  }
  func.func @transform_7(%arg0: i32, %arg1: i32, %arg2: memref<4xi32, #tpu.memory_space<smem>>) -> (i32, i32) {
    %c0_i32 = arith.constant 0 : i32
    %c0_i32_0 = arith.constant 0 : i32
    %c0_i32_1 = arith.constant 0 : i32
    return %c0_i32, %c0_i32_0 : i32, i32
  }
  func.func @transform_8(%arg0: i32, %arg1: i32, %arg2: memref<4xi32, #tpu.memory_space<smem>>) -> (i32, i32) {
    %c0_i32 = arith.constant 0 : i32
    %c0_i32_0 = arith.constant 0 : i32
    %c0_i32_1 = arith.constant 0 : i32
    return %c0_i32, %c0_i32_0 : i32, i32
  }
  func.func @transform_9(%arg0: i32, %arg1: i32, %arg2: memref<4xi32, #tpu.memory_space<smem>>) -> (i32, i32) {
    %c0_i32 = arith.constant 0 : i32
    %c0_i32_0 = arith.constant 0 : i32
    %c0_i32_1 = arith.constant 0 : i32
    return %c0_i32, %c0_i32_0 : i32, i32
  }
  func.func @transform_10(%arg0: i32, %arg1: i32, %arg2: memref<4xi32, #tpu.memory_space<smem>>) -> (i32, i32, i32, i32) {
    %c0_i32 = arith.constant 0 : i32
    %c0_i32_0 = arith.constant 0 : i32
    %c0_i32_1 = arith.constant 0 : i32
    return %arg1, %arg0, %c0_i32, %c0_i32_0 : i32, i32, i32, i32
  }
}

</mosaic_0001>

<bundles_post_ra>
// kernel: tpu_custom_call.1
= control target key start
LH: loop header
LB: loop body
LE: loop exit
PB: predicated region body
PF: predicated region fallthrough
CT: control target
= control target key end

     0   :  { %s3977_s17 = smov [#allocation8]   ;;  %s4632_s0 = inlined_call_operand.hbm [shape: s32[4], index: 0, kind: input, shape index: {}]   ;;  %s4633_s1 = inlined_call_operand.vmem [shape: f32[4,2,16,128], index: 1, kind: input, shape index: {}]   ;;  %s4634_s2 = inlined_call_operand.vmem [shape: f32[4,2,1,128], index: 2, kind: input, shape index: {}]   ;;  %s4635_s3 = inlined_call_operand.hbm [shape: f32[2,32,128], index: 3, kind: input, shape index: {}]   ;;  %s4636_s4 = inlined_call_operand.hbm [shape: bf16[2,2,128,128], index: 4, kind: input, shape index: {}]   ;;  %s4637_s5 = inlined_call_operand.hbm [shape: bf16[64,240], index: 5, kind: input, shape index: {}]   ;;  %s4638_s6 = inlined_call_operand.vmem [shape: f32[64,1], index: 6, kind: input, shape index: {}]   ;;  %s4639_s7 = inlined_call_operand.hbm [shape: bf16[32,240], index: 7, kind: input, shape index: {}]   ;;  %s4640_s8 = inlined_call_operand.vmem [shape: f32[32,1], index: 8, kind: input, shape index: {}]   ;;  %s4641_s9 = inlined_call_operand.vmem [shape: f32[32,1], index: 9, kind: input, shape index: {}]   ;;  %s4642_s11 = inlined_call_operand.hbm [shape: f32[4,2,1,128], index: 11, kind: output, shape index: {}]   ;;  %s4643_s10 = inlined_call_operand.<no memory space> [shape: f32[1,1], index: 10, kind: input, shape index: {}]  }
   0x1   :  { %4660 = sst [smem:[#allocation30_spill]] %s4636_s4  ;;  %v18_v0 = vstv %s4643_s10 }
   0x2   :  { %4661 = sst [smem:[#allocation31_spill]] %s4637_s5  ;;  %19 = vst [vmem:[#allocation9] sm:$0x1] %v18_v0 }
   0x3   :  { %4662 = sst [smem:[#allocation32_spill]] %s4638_s6 }
   0x4   :  { %4663 = sst [smem:[#allocation33_spill]] %s4639_s7 }
   0x5   :  { %4664 = sst [smem:[#allocation34_spill]] %s4640_s8 }
   0x6   :  { %4665 = sst [smem:[#allocation35_spill]] %s4641_s9 }
   0x7   :  { %4666 = sst [smem:[#allocation36_spill]] %s4642_s11 }
   0x8   :  { %17 = dma.hbm_to_smem %s4632_s0, 16, %s3977_s17, [#allocation7] }
   0x9   :  { %3915 = dma.done.wait [#allocation7], 16 }
   0xa   :  { %3916 = vsyncadd [#allocation7], 4294967280 }
   0xb   :  { %21 = sfence }
   0xc   :  { %22 = vsyncpa [#allocation11], 0 }
   0xd   :  { %24 = vsyncpa [#allocation11 + $0x1], 0 }
   0xe   :  { %25 = vsyncpa [#allocation14], 0 }
   0xf   :  { %26 = vsyncpa [#allocation17], 0 }
  0x10   :  { %27 = vsyncpa [#allocation12], 0 }
  0x11   :  { %29 = vsyncpa [#allocation12 + $0x1], 0  ;;  %s4057_s22 = smov 0   ;;  %s4059_s23 = smov 0  }
  0x12   :  { %s4061_s24 = smov 0   ;;  %s4063_s0 = smov 0  }
  0x13   :  { %s4065_s25 = smov 0   ;;  %s4067_s10 = smov 0  }
  0x14   :  { %s4069_s26 = smov 0   ;;  %s4071_s27 = smov 0  }
  0x15   :  { %s4073_s28 = smov 0   ;;  %s4075_s29 = smov 0  }
  0x16   :  { %s4077_s30 = smov 0  }
  0x17 LB: > { %4667 = sst [smem:[#allocation24_spill]] %s3935_s22  ;;  %s2678_s12 = sadd.s32 4294967295, %s3975_s30   ;;  %s3975_s30 = sphi %s4077_s30, %s35_s30   ;;  %s3971_s29 = sphi %s4075_s29, %s4707_s29   ;;  %s3967_s28 = sphi %s4073_s28, %s4698_s28   ;;  %s3963_s27 = sphi %s4071_s27, %s4706_s27   ;;  %s3959_s26 = sphi %s4069_s26, %s4697_s26   ;;  %s3955_s10 = sphi %s4067_s10, %s4705_s10   ;;  %s3951_s25 = sphi %s4065_s25, %s4704_s25   ;;  %s3947_s0 = sphi %s4063_s0, %s4703_s0   ;;  %s3943_s24 = sphi %s4061_s24, %s4702_s24   ;;  %s3939_s23 = sphi %s4059_s23, %s4701_s23   ;;  %s3935_s22 = sphi %s4057_s22, %s4700_s22  }
  0x18   : > { %4668 = sst [smem:[#allocation25_spill]] %s3967_s28  ;;  %s2679_s13 = sadd.s32 4294967294, %s3975_s30  }
  0x19   : > { %p123_p0 = scmp.ne.s32.totalorder %s3951_s25, %s3947_s0  ;;  %p4113_p1 = scmp.eq.s32.totalorder %s2678_s12, 0 }
  0x1a   : > { %p295_p2 = scmp.ne.s32.totalorder %s3943_s24, %s3939_s23  ;;  %p296_p4 = scmp.eq.s32.totalorder %s2678_s12, 7 }
  0x1b   : > { %s4669_s14 = scalar_select %p4113_p1, 1, 0 }
  0x1c   : > { %p4122_p3 = por %p4113_p1, %p123_p0  ;;  %p301_p5 = scmp.ne.s32.totalorder %s3939_s23, %s3935_s22 }
  0x1d   : > { %p302_p6 = scmp.eq.s32.totalorder %s2679_s13, 7  ;;  %p4128_p7 = por %p296_p4, %p295_p2 }
  0x1e   : > { %p2680_p8 = scmp.ge.s32.totalorder %s3975_s30, 1  ;;  %p309_p10 = scmp.lt.s32.totalorder %s3975_s30, 9 }
  0x1f   : > { %s4671_s17 = scalar_select %p4128_p7, 1, 0 }
  0x20   : > { %p4133_p9 = por %p302_p6, %p301_p5  ;;  %p4138_p11 = pnand %p2680_p8, %p309_p10 }
  0x21   : > { %4672 = sst [smem:[#allocation26_spill]] %s4671_s17  ;;  %s3978_s20 = smov [#allocation13]  }
  0x22   : > { %s4673_s18 = scalar_select %p4133_p9, 1, 0 }
  0x23   : > { %s321_s21 = sshll.u32 %s3978_s20, 4  ;;  %p3450_p12 = pneg %p4138_p11  ;;  %s322_s21 = int_to_ptr.vmem [resolvable:$true] %s321_s21 }
  0x24   : > { %4674 = sst [smem:[#allocation27_spill]] %s4673_s18  ;;  %s3979_s12 = smov [#allocation15]  }
  0x25   : > { %p4146_p13 = pnand %p3450_p12, %p4113_p1  ;;  %s334_s13 = sshll.u32 %s3979_s12, 4  ;;  %s335_s13 = int_to_ptr.vmem [resolvable:$true] %s334_s13 }
  0x26   : > { %s3750_s15 = scalar_lea.vmem %s322_s21, 4096  ;;  %p3758_p6 = scmp.lt.s32.totalorder %s322_s21, %s322_s21 }
  0x27   : > { %p3741_p0 = pneg %p4146_p13  ;;  %p3751_p2 = scmp.ne.s32.totalorder %s322_s21, %s3750_s15 }
  0x28   : > { %p3759_p8 = scmp.lt.s32.totalorder %s3750_s15, %s3750_s15 }
  0x29   : > { %p3753_p4 = pnand %p3751_p2, %p3741_p0 }
  0x2a   : > { %p3760_p10 = por %p3759_p8, %p3758_p6 }
  0x2b   : > { %p3754_p5 = pneg %p3753_p4 }
  0x2d   : > { %p3761_p12 = pnand %p3760_p10, %p3754_p5 }
  0x2f   : > { %3764 = shalt.err (!%p3761_p12)
}
  0x30   : > { %s3980_s20 = smov 64   ;;  %s3981_s18 = smov 4  }
  0x31   : > { %s4677_s4 = sld [smem:[#allocation30_spill]]  ;;  %s3776_s11 = scalar_lea.vmem %s335_s13, 1024 }
  0x32   : > { %p3777_p9 = scmp.ne.s32.totalorder %s335_s13, %s3776_s11  ;;  %p3784_p7 = scmp.lt.s32.totalorder %s335_s13, %s335_s13 }
  0x33   : > { %p3785_p1 = scmp.lt.s32.totalorder %s3776_s11, %s3776_s11 }
  0x34   : > { %p3779_p2 = pnand %p3777_p9, %p3741_p0 }
  0x35   : > { %p3786_p6 = por %p3785_p1, %p3784_p7 }
  0x36   : > { %p3780_p4 = pneg %p3779_p2 }
  0x37   : > { %3453 = dma.hbm_to_vmem [thread:$0]  (!%p4146_p13), %s4677_s4, 4096, %s322_s21, [#allocation14], %s3980_s20, %s3980_s20, %s3981_s18  }
  0x38   : > { %p3787_p5 = pnand %p3786_p6, %p3780_p4 }
  0x3a   : > { %3790 = shalt.err (!%p3787_p5)
}
  0x3b   : > { %s4652_s15 = smov 128   ;;  %s4653_s17 = smov 8  }
  0x3c   : > { %s4678_s5 = sld [smem:[#allocation31_spill]]  ;;  %s3984_s21 = smov [#allocation16]  }
  0x3d   : > { %s350_s20 = sshll.u32 %s3984_s21, 4  ;;  %s351_s20 = int_to_ptr.vmem [resolvable:$true] %s350_s20 }
  0x3e   : > { %s3802_s12 = scalar_lea.vmem %s351_s20, 512  ;;  %p3810_p8 = scmp.lt.s32.totalorder %s351_s20, %s351_s20 }
  0x3f   : > { %p3803_p9 = scmp.ne.s32.totalorder %s351_s20, %s3802_s12  ;;  %p3811_p10 = scmp.lt.s32.totalorder %s3802_s12, %s3802_s12 }
  0x41   : > { %p3805_p1 = pnand %p3803_p9, %p3741_p0  ;;  %p3812_p12 = por %p3811_p10, %p3810_p8 }
  0x42   : > { %3456 = dma.hbm_to_vmem [thread:$0]  (!%p4146_p13), %s4678_s5, 1024, %s335_s13, [#allocation14], %s4652_s15, %s4652_s15, %s4653_s17  }
  0x43   : > { %p3806_p7 = pneg %p3805_p1 }
  0x45   : > { %p3813_p2 = pnand %p3812_p12, %p3806_p7 }
  0x47   : > { %3816 = shalt.err (!%p3813_p2)
}
  0x48   : > { %s4679_s7 = sld [smem:[#allocation33_spill]]  ;;  %s44_s22 = sadd.s32 1, %s3967_s28 }
  0x49   : > { %p45_p0 = scmp.ge.s32.totalorder %s44_s22, 4  ;;  %s47_s0 = sadd.s32 1, %s3971_s29 }
  0x4a   : > { %s110_s18 = sadd.s32 1, %s3955_s10  ;;  %p117_p4 = scmp.ne.s32.totalorder %s3955_s10, %s3951_s25 }
  0x4b   : > { %s4709_s22 = smov (%p45_p0, %s44_s22), 0  ;;  %s4711_s0 = smov (!%p45_p0, %s47_s0), %s3971_s29 }
  0x4c   : > { %4680 = sst [smem:[#allocation28_spill]] %s4709_s22  ;;  %p118_p6 = scmp.eq.s32.totalorder %s3975_s30, 0 }
  0x4d   : > { %s280_s21 = ssub.s32 %s3967_s28, %s4709_s22  ;;  %p49_p5 = scmp.ge.s32.totalorder %s4711_s0, 2 }
  0x4e   : > { %3459 = dma.hbm_to_vmem [thread:$0]  (!%p4146_p13), %s4679_s7, 512, %s351_s20, [#allocation17], %s4652_s15, %s4652_s15, %s4653_s17  }
  0x4f   : > { %p3471_p9 = scmp.lt.s32.totalorder %s3975_s30, 8  ;;  %p4194_p13 = por %p118_p6, %p117_p4 }
  0x50   : > { %s395_s12 = sand.u32 1, %s3955_s10   ;;  %s4713_s0 = smov (%p49_p5, %s4711_s0), 0 }
  0x51   : > { %4682 = sst [smem:[#allocation29_spill]] %s4713_s0  ;;  %s2685_s11 = sshll.u32 %s395_s12, 5 }
  0x52   : > { %s107_s13 = ssub.s32 %s3971_s29, %s4713_s0  ;;  %s2883_s17 = sshll.u32 %s3971_s29, 9 }
  0x53   : > { %p108_p1 = scmp.eq.s32.totalorder %s107_s13, 0  ;;  %s282_s15 = sor.u32 %s280_s21, %s107_s13 }
  0x54   : > { %p283_p7 = scmp.eq.s32.totalorder %s282_s15, 0  ;;  %s4683_s5 = sadd.s32 1, %s3943_s24 }
  0x55   : > { %s4205_s4 = scalar_select %p108_p1, %s3955_s10, %s110_s18  }
  0x56   : > { %s4210_s7 = scalar_select %p283_p7, %s3943_s24, %s4683_s5  }
  0x57   : > { %s405_s9 = scalar_lea.hbm %s4635_s3, %s2883_s17  ;;  %s399_s8 = scalar_lea.vmem [#allocation10], %s2685_s11 }
  0x58   : > { %s406_s6 = sshll.u32 %s399_s8, 4  ;;  %p4219_p8 = pnand %p3471_p9, %p4194_p13  ;;  %s407_s6 = int_to_ptr.vmem [resolvable:$true] %s406_s6 }
  0x59   : > { %s396_s15 = scalar_lea.sflag [#allocation11], %s395_s12  ;;  %s3830_s18 = scalar_lea.vmem %s407_s6, 512 }
  0x5a   : > { %p3819_p10 = pneg %p4219_p8  ;;  %p3831_p12 = scmp.ne.s32.totalorder %s407_s6, %s3830_s18 }
  0x5b   : > { %s3985_s5 = smov [#allocation10]  }
  0x5c   : > { %p3833_p2 = pnand %p3831_p12, %p3819_p10  ;;  %s3835_s28 = sshll.u32 %s3985_s5, 4  ;;  %s3836_s28 = int_to_ptr.vmem [resolvable:$false] %s3835_s28 }
  0x5d   : > { %s3837_s17 = scalar_lea.vmem %s3836_s28, 1024  ;;  %p3838_p4 = scmp.lt.s32.totalorder %s407_s6, %s3836_s28 }
  0x5e   : > { %p3834_p0 = pneg %p3833_p2  ;;  %p3839_p6 = scmp.lt.s32.totalorder %s3837_s17, %s3830_s18 }
  0x60   : > { %p3840_p5 = por %p3839_p6, %p3838_p4 }
  0x62   : > { %p3841_p1 = pnand %p3840_p5, %p3834_p0 }
  0x64   : > { %3844 = shalt.err (!%p3841_p1)
}
  0x65   : > { %s4685_s8 = smov 8   ;;  %s4686_s22 = smov 128  }
  0x66   : > { %3463 = dma.hbm_to_vmem [thread:$0]  (!%p4219_p8), %s405_s9, 512, %s407_s6, %s396_s15, %s4686_s22, %s4686_s22, %s4685_s8  }
  0x67   : > { %418 = sbr.rel (%p4138_p11) target bundleno = 1624 (0x658), region = 60  ;;  %s420_s21 = sand.u32 (!%p4138_p11), 1, %s3951_s25  }
  0x68   : > { %s2689_s20 = sshll.u32 (!%p4138_p11), %s420_s21, 5  ;;  %s421_s12 = scalar_lea.sflag (!%p4138_p11), [#allocation11], %s420_s21 }
  0x69   : > { %s424_s11 = scalar_lea.vmem (!%p4138_p11), [#allocation10], %s2689_s20 }
  0x6c   : > { %3918 = dma.done.wait (%p4122_p3), %s421_s12, 512  }
  0x6d   : > { %3920 = vsyncadd (%p4122_p3), %s421_s12, 4294966784  ;;  %p4687_p9 = scmp.ne.s32.totalorder %s4669_s14, 0 }
  0x6f   : > { %3922 = dma.done.wait (%p4687_p9), [#allocation14], 5120  }
  0x70   : > { %3924 = vsyncadd (%p4687_p9), [#allocation14], 4294962176 }
  0x71   : > { %3926 = dma.done.wait (%p4687_p9), [#allocation17], 512  }
  0x72   : > { %3928 = vsyncadd (%p4687_p9), [#allocation17], 4294966784  ;;  %s486_s6 = sand.u32 1, %s3939_s23   ;;  %p488_p3 = scmp.lt.s32.totalorder %s3959_s26, 3 }
  0x73   : > { %p490_p11 = scmp.lt.s32.totalorder %s3963_s27, 1  ;;  %s4263_s20 = scalar_lea.vmem [#allocation18], %s486_s6 }
  0x74   : > { %s489_s9 = scalar_select %p488_p3, %s3959_s26, 3 }
  0x75   : > { %s491_s16 = scalar_select %p490_p11, %s3963_s27, 1 }
  0x76   : > { %s2694_s19 = sshll.u32 %s489_s9, 2  ;;  %s2696_s0 = sshll.u32 %s489_s9, 1 }
  0x77   : > { %s2693_s13 = sshll.u32 %s491_s16, 1  ;;  %s4250_s15 = sadd.s32 %s2696_s0, %s491_s16 }
  0x78   : > { %s494_s18 = sadd.s32 %s2694_s19, %s2693_s13  ;;  %s503_s28 = scalar_lea.vmem %s4634_s2, %s4250_s15 }
  0x79   : > { %s2695_s17 = sshll.u32 %s494_s18, 3  ;;  %p2697_p13 = scmp.ne.s32.totalorder %s3959_s26, 0 }
  0x7a   : > { %s4259_s21 = scalar_lea.vmem %s4633_s1, %s2695_s17 }
  0x7b   : > { %508 = sbr.rel (%p2697_p13) target bundleno = 132 (0x84), region = 80 }
  0x80   : > { %v509_v1 = vld [vmem:[%s424_s11] sm:$0xff]  ;;  %v510_v2 = vld [vmem:[%s424_s11 + $0x8] sm:$0xff]  ;;  %v511_v3 = vld [vmem:[%s424_s11 + $0x10] sm:$0xff]  ;;  %v3986_v5 = vmov 0.0  }
  0x81   : > { %513 = vst [vmem:[#allocation2 + $0x10] sm:$0xff] %v509_v1  ;;  %514 = vst [vmem:[#allocation2] sm:$0xff] %v510_v2  ;;  %v512_v4 = vld [vmem:[%s424_s11 + $0x18] sm:$0xff] }
  0x82   : > { %515 = vst [vmem:[#allocation2 + $0x18] sm:$0xff] %v511_v3  ;;  %517 = vst [vmem:[#allocation3] sm:$0x1] %v3986_v5 }
  0x83   : > { %516 = vst [vmem:[#allocation2 + $0x8] sm:$0xff] %v512_v4 }
  0x84 PF: > { %v3578_v6 = vld [vmem:[#allocation13 + $0x38] sm:$0xff]   ;;  %v3987_v7 = vmov 0.0   ;;  %v3579_v8 = vld [vmem:[#allocation13 + $0x30] sm:$0xff]   ;;  %vm3988_vm0 = vmmov 0   ;;  %v3580_v9 = vld [vmem:[#allocation13 + $0x28] sm:$0xff]   ;;  %v520_v10 = vlaneseq  ;;  %vm1411_vm2 = vcmask 916480  }
  0x85   : > { %3210 = vmatprep.subr.bf16.mxu1 %v3987_v7  ;;  %3266 = vmatprep.subr.bf16.mxu0 %v3987_v7  ;;  %v3585_v11 = vld [vmem:[#allocation13 + $0x78] sm:$0xff]   ;;  %v3581_v12 = vld [vmem:[#allocation13 + $0x20] sm:$0xff]   ;;  %v3587_v13 = vld [vmem:[#allocation13 + $0x70] sm:$0xff]   ;;  %s4688_s9 = sld [smem:[#allocation32_spill]]  ;;  %s2879_s11 = sshll.u32 %s3959_s26, 1 }
  0x86   : > { %3211 = vmatpush3.bf16.msra.mxu1 %v3578_v6  ;;  %3226 = vmatprep.mubr.msk.bf16.mxu1 %vm3988_vm0, %v3987_v7  ;;  %v4279_v16 = vshrl.u32 %v520_v10, 7  ;;  %v3588_v18 = vld [vmem:[#allocation13 + $0x68] sm:$0xff]   ;;  %v3582_v21 = vld [vmem:[#allocation13 + $0x18] sm:$0xff]   ;;  %v3589_v26 = vld [vmem:[#allocation13 + $0x60] sm:$0xff]   ;;  %s4689_s18 = sld [smem:[#allocation34_spill]]  ;;  %s2530_s16 = sadd.s32 %s3963_s27, %s2879_s11 }
  0x87   : > { %3212 = vmatprep.subr.bf16.mxu1 %v3987_v7  ;;  %3282 = vmatprep.mubr.msk.bf16.mxu0 %vm3988_vm0, %v3987_v7  ;;  %v518_v23 = vld [vmem:[%s4259_s21] sm:$0xff]  ;;  %v4295_v24 = vld [vmem:[%s4259_s21 + $0x8] sm:$0xff]  ;;  %v3590_v30 = vld [vmem:[#allocation13 + $0x58] sm:$0xff]   ;;  %s4690_s19 = sld [smem:[#allocation35_spill]]  ;;  %s2880_s17 = sshll.u32 %s2530_s16, 4 }
  0x88   : > { %3267 = vmatpush3.bf16.msra.mxu0 %v3585_v11  ;;  %v4275_v14 = vld [vmem:[#allocation2 + $0x10] sm:$0xff]  ;;  %v4277_v15 = vld [vmem:[#allocation2] sm:$0xff]  ;;  %vm523_vm1 = vcmp.eq.s32.totalorder %v4279_v16, 0  ;;  %s4691_s5 = sld [smem:[#allocation26_spill]]  ;;  %s2534_s8 = sshll.u32 %s4263_s20, 4  ;;  %s2535_s8 = int_to_ptr.vmem [resolvable:$true] %s2534_s8 }
  0x89   : > { %3268 = vmatprep.subr.bf16.mxu0 %v3987_v7  ;;  %v550_v17 = vpack.c.bf16 %v4277_v15, %v4275_v14  ;;  %v4284_v19 = vld [vmem:[#allocation2 + $0x18] sm:$0xff]  ;;  %v2698_v25 = vld [vmem:[#allocation3] ss:$0 sm:$0xff]  ;;  %v3583_v28 = vld [vmem:[#allocation13 + $0x10] sm:$0xff]   ;;  %s2520_s15 = scalar_lea.sflag [#allocation12], %s486_s6 }
  0x8a   : > { %3213 = vmatpush3.bf16.msra.mxu1 %v3579_v8  ;;  %v4286_v20 = vld [vmem:[#allocation2 + $0x8] sm:$0xff]  ;;  %v4297_v27 = vsel %vm523_vm1, %v2698_v25, %v518_v23  ;;  %v3586_v32 = vld [vmem:[#allocation13] sm:$0xff]   ;;  %v3594_v35 = vld [vmem:[#allocation13 + $0xb8] sm:$0xff]   ;;  %v3989_v25 = vmov 0  }
  0x8b   : > { %3214 = vmatprep.subr.bf16.mxu1 %v3987_v7  ;;  %2948 = vst [vmem:[#allocation6] sm:$0xff] %v550_v17   ;;  %v551_v22 = vpack.c.bf16 %v4286_v20, %v4284_v19  ;;  %v4302_v29 = vpack.c.bf16 %v4295_v24, %v4297_v27  ;;  %v3584_v31 = vld [vmem:[#allocation13 + $0x8] sm:$0xff]   ;;  %v3591_v33 = vld [vmem:[#allocation13 + $0x50] sm:$0xff]   ;;  %v3593_v36 = vld [vmem:[#allocation13 + $0x40] sm:$0xff]   ;;  %3576 = vset.pattern.permute.xlu0 %v3989_v25 }
  0x8c   : > { %3269 = vmatpush3.bf16.msra.mxu0 %v3587_v13  ;;  %v3592_v34 = vld [vmem:[#allocation13 + $0x48] sm:$0xff]   ;;  %v3595_v37 = vld [vmem:[#allocation13 + $0xb0] sm:$0xff]   ;;  %v3597_v39 = vld [vmem:[#allocation13 + $0xa0] sm:$0xff]   ;;  %3577 = vset.pattern.permute.xlu1 %v3989_v25 }
  0x8d   : > { %3270 = vmatprep.subr.bf16.mxu0 %v3987_v7  ;;  %3094 = vst [vmem:[#allocation6 + $0x8] sm:$0xff] %v551_v22   ;;  %3095 = vst [vmem:[#allocation6 + $0x10] sm:$0xff] %v4302_v29   ;;  %v3596_v38 = vld [vmem:[#allocation13 + $0xa8] sm:$0xff]   ;;  %v3598_v40 = vld [vmem:[#allocation13 + $0x98] sm:$0xff]  }
  0x8e   : > { %3215 = vmatpush3.bf16.msra.mxu1 %v3580_v9  ;;  %v3599_v41 = vld [vmem:[#allocation13 + $0x90] sm:$0xff]   ;;  %v3600_v42 = vld [vmem:[#allocation13 + $0x88] sm:$0xff]   ;;  %v3601_v43 = vld [vmem:[#allocation13 + $0x80] sm:$0xff]   ;;  %p4693_p10 = scmp.ne.s32.totalorder %s4691_s5, 0 }
  0x8f   : > { %3216 = vmatprep.subr.bf16.mxu1 %v3987_v7  ;;  %v3602_v47 = vld [vmem:[#allocation13 + $0xf8] sm:$0xff]   ;;  %v3603_v52 = vld [vmem:[#allocation13 + $0xf0] sm:$0xff]   ;;  %v3604_v57 = vld [vmem:[#allocation13 + $0xe8] sm:$0xff]  }
  0x90   : > { %3271 = vmatpush3.bf16.msra.mxu0 %v3588_v18  ;;  %v3605_v0 = vld [vmem:[#allocation13 + $0xe0] sm:$0xff]   ;;  %v3606_v5 = vld [vmem:[#allocation13 + $0xd8] sm:$0xff]   ;;  %v3608_v18 = vld [vmem:[#allocation13 + $0xc8] sm:$0xff]  }
  0x91   : > { %3272 = vmatprep.subr.bf16.mxu0 %v3987_v7  ;;  %v3609_v23 = vld [vmem:[#allocation13 + $0xc0] sm:$0xff]  }
  0x92   : > { %3217 = vmatpush3.bf16.msra.mxu1 %v3581_v12  ;;  %v3607_v12 = vld [vmem:[#allocation13 + $0xd0] sm:$0xff]  }
  0x93   : > { %3218 = vmatprep.subr.bf16.mxu1 %v3987_v7 }
  0x94   : > { %3273 = vmatpush3.bf16.msra.mxu0 %v3589_v26  ;;  %v4356_v26 = vld [vmem:[#allocation6 + $0x10] sm:$0xff]  }
  0x95   : > { %3274 = vmatprep.subr.bf16.mxu0 %v3987_v7  ;;  %3109 = vst [vmem:[#allocation6 + $0x10] sm:$0xff] %v4302_v29  }
  0x96   : > { %3219 = vmatpush3.bf16.msra.mxu1 %v3582_v21 }
  0x97   : > { %3220 = vmatprep.subr.bf16.mxu1 %v3987_v7 }
  0x98   : > { %3275 = vmatpush3.bf16.msra.mxu0 %v3590_v30  ;;  %v1237_v30 = vld [vmem:[%s4688_s9] sm:$0xff] }
  0x99   : > { %3276 = vmatprep.subr.bf16.mxu0 %v3987_v7  ;;  %1247 = vperm.xlu0 %3576, %v1237_v30  }
  0x9a   : > { %3221 = vmatpush3.bf16.msra.mxu1 %v3583_v28  ;;  %v3627_v28 = vld [vmem:[#allocation15 + $0x4] ss:$8 sps:$4 sm:$0xff]  }
  0x9b   : > { %3222 = vmatprep.subr.bf16.mxu1 %v3987_v7 }
  0x9c   : > { %3277 = vmatpush3.bf16.msra.mxu0 %v3591_v33  ;;  %v1240_v33 = vld [vmem:[%s4688_s9 + $0x18] sm:$0xff] }
  0x9d   : > { %3278 = vmatprep.subr.bf16.mxu0 %v3987_v7 }
  0x9e   : > { %3223 = vmatpush3.bf16.msra.mxu1 %v3584_v31  ;;  %v1239_v31 = vld [vmem:[%s4688_s9 + $0x10] sm:$0xff] }
  0x9f   : > { %3224 = vmatprep.subr.bf16.mxu1 %v3987_v7  ;;  %1257 = vperm.xlu1 %3577, %v1239_v31  }
  0xa0   : > { %3279 = vmatpush3.bf16.msra.mxu0 %v3592_v34  ;;  %v1241_v34 = vld [vmem:[%s4688_s9 + $0x20] sm:$0xff] }
  0xa1   : > { %3280 = vmatprep.subr.bf16.mxu0 %v3987_v7 }
  0xa2   : > { %3225 = vmatpush3.bf16.msra.mxu1 %v3586_v32  ;;  %v1238_v32 = vld [vmem:[%s4688_s9 + $0x8] sm:$0xff] }
  0xa3   : > { %3238 = vmatprep.subr.bf16.mxu1 %v3987_v7  ;;  %1252 = vperm.xlu0 %3576, %v1238_v32  }
  0xa4   : > { %3281 = vmatpush3.bf16.msra.mxu0 %v3593_v36  ;;  %1262 = vperm.xlu1 %3577, %v1240_v33   ;;  %v1243_v36 = vld [vmem:[%s4688_s9 + $0x30] sm:$0xff] }
  0xa5   : > { %3227 = vmatmul.mubr.bf16.vlgmr.msra.gmra.mxu1 %v550_v17  ;;  %1424 = vmatprep.subr.bf16.mxu0 %v3989_v25 }
  0xa6   : > { %3230 = vmatprep.mubr.msk.bf16.mxu1 %vm3988_vm0, %v3987_v7  ;;  %3239 = vmatpush3.bf16.msra.mxu1 %v3594_v35  ;;  %v1242_v35 = vld [vmem:[%s4688_s9 + $0x28] sm:$0xff] }
  0xa7   : > { %3240 = vmatprep.subr.bf16.mxu1 %v3987_v7  ;;  %3283 = vmatmul.mubr.bf16.vlgmr.msra.gmra.mxu0 %v550_v17 }
  0xa8   : > { %3286 = vmatprep.mubr.msk.bf16.mxu0 %vm3988_vm0, %v3987_v7  ;;  %1267 = vperm.xlu0 %3576, %v1241_v34  }
  0xa9   : > { %1272 = vperm.xlu1 %3577, %v1242_v35   ;;  %v3617_v35 = vld [vmem:[#allocation6] sm:$0xff]  }
  0xaa   : > { %3241 = vmatpush3.bf16.msra.mxu1 %v3595_v37 }
  0xab   : > { %3242 = vmatprep.subr.bf16.mxu1 %v3987_v7 }
  0xac   : > { %1277 = vperm.xlu0 %3576, %v1243_v36  }
  0xad   : > { %3231 = vmatmul.mubr.bf16.gmra.mxu1 %v551_v22 }
  0xae   : > { %3234 = vmatprep.mubr.msk.bf16.mxu1 %vm3988_vm0, %v3987_v7  ;;  %3243 = vmatpush3.bf16.msra.mxu1 %v3596_v38  ;;  %v1244_v38 = vld [vmem:[%s4688_s9 + $0x38] sm:$0xff] }
  0xaf   : > { %3244 = vmatprep.subr.bf16.mxu1 %v3987_v7  ;;  %3287 = vmatmul.mubr.bf16.gmra.mxu0 %v551_v22 }
  0xb0   : > { %3290 = vmatprep.mubr.msk.bf16.mxu0 %vm3988_vm0, %v3987_v7  ;;  %1282 = vperm.xlu1 %3577, %v1244_v38  }
  0xb2   : > { %3245 = vmatpush3.bf16.msra.mxu1 %v3597_v39 }
  0xb3   : > { %3246 = vmatprep.subr.bf16.mxu1 %v3987_v7 }
  0xb5   : > { %3235 = vmatmul.mubr.bf16.gmra.mxu1 %v4302_v29 }
  0xb6   : > { %3254 = vmatprep.mubr.msk.bf16.mxu1 %vm3988_vm0, %v3987_v7  ;;  %3247 = vmatpush3.bf16.msra.mxu1 %v3598_v40  ;;  %v2243_v40 = vld [vmem:[%s4689_s18] sm:$0xff] }
  0xb7   : > { %3248 = vmatprep.subr.bf16.mxu1 %v3987_v7  ;;  %3291 = vmatmul.mubr.bf16.gmra.mxu0 %v4302_v29 }
  0xb8   : > { %2784 = vmatprep.mubr.msk.bf16.mxu0 %vm1411_vm2, %v3627_v28  ;;  %2249 = vperm.xlu0 %3576, %v2243_v40  }
  0xba   : > { %3249 = vmatpush3.bf16.msra.mxu1 %v3599_v41 }
  0xbb   : > { %3250 = vmatprep.subr.bf16.mxu1 %v3987_v7 }
  0xbe   : > { %3251 = vmatpush3.bf16.msra.mxu1 %v3600_v42  ;;  %v2244_v42 = vld [vmem:[%s4689_s18 + $0x8] sm:$0xff] }
  0xbf   : > { %3252 = vmatprep.subr.bf16.mxu1 %v3987_v7  ;;  %2254 = vperm.xlu1 %3577, %v2244_v42  }
  0xc2   : > { %3253 = vmatpush3.bf16.msra.mxu1 %v3601_v43 }
  0xc3   : > { %3294 = vmatprep.subr.bf16.mxu1 %v3987_v7 }
 0x165   : > { %v695_v44 = vpop.f32.mrf.mxu1 }
 0x167   : > { %v3228_v45 = vpop.f32.mrf.mxu1  ;;  %v1005_v50 = vpop.f32.mrf.mxu0 }
 0x169   : > { %v698_v46 = vpop.f32.mrf.mxu1  ;;  %v3284_v53 = vpop.f32.mrf.mxu0 }
 0x16a   : > { %v718_v48 = vpack.c.bf16 %v698_v46, %v695_v44 }
 0x16b   : > { %v3229_v49 = vpop.f32.mrf.mxu1  ;;  %v1008_v55 = vpop.f32.mrf.mxu0 }
 0x16c   : > { %3096 = vst [vmem:[#allocation6 + $0x18] sm:$0xff] %v718_v48   ;;  %3255 = vmatmul.mubr.bf16.vlgmr.msra.gmra.mxu1 %v718_v48  ;;  %v1028_v58 = vpack.c.bf16 %v1008_v55, %v1005_v50  ;;  %v2246_v49 = vld [vmem:[%s4689_s18 + $0x18] sm:$0xff] }
 0x16d   : > { %3295 = vmatpush3.bf16.msra.mxu1 %v3602_v47  ;;  %v703_v51 = vpop.f32.mrf.mxu1  ;;  %3258 = vmatprep.mubr.msk.bf16.mxu1 %vm3988_vm0, %v3987_v7  ;;  %v3285_v60 = vpop.f32.mrf.mxu0  ;;  %v2245_v47 = vld [vmem:[%s4689_s18 + $0x10] sm:$0xff] }
 0x16e   : > { %3296 = vmatprep.subr.bf16.mxu1 %v3987_v7  ;;  %3102 = vst [vmem:[#allocation6 + $0x48] sm:$0xff] %v1028_v58   ;;  %2259 = vperm.xlu0 %3576, %v2245_v47   ;;  %v2465_v60 = vld [vmem:[%s4690_s19 + $0x18] sm:$0xff] }
 0x16f   : > { %v3232_v54 = vpop.f32.mrf.mxu1  ;;  %v1013_v62 = vpop.f32.mrf.mxu0  ;;  %2264 = vperm.xlu1 %3577, %v2246_v49   ;;  %v3631_v47 = vld [vmem:[#allocation15 + $0x24] ss:$8 sps:$4 sm:$0xff]   ;;  %v3634_v49 = vld [vmem:[#allocation15 + $0x34] ss:$8 sps:$4 sm:$0xff]  }
 0x170   : > { %v2463_v54 = vld [vmem:[%s4690_s19 + $0x8] sm:$0xff] }
 0x171   : > { %3297 = vmatpush3.bf16.msra.mxu1 %v3603_v52  ;;  %v706_v56 = vpop.f32.mrf.mxu1  ;;  %v3288_v1 = vpop.f32.mrf.mxu0  ;;  %v2462_v52 = vld [vmem:[%s4690_s19] sm:$0xff] }
 0x172   : > { %v719_v59 = vpack.c.bf16 %v706_v56, %v703_v51  ;;  %3298 = vmatprep.subr.bf16.mxu1 %v3987_v7  ;;  %2468 = vperm.xlu0 %3576, %v2462_v52   ;;  %v3638_v52 = vld [vmem:[#allocation13 + $0x78] sm:$0xff]  }
 0x173   : > { %v3233_v61 = vpop.f32.mrf.mxu1  ;;  %v1016_v3 = vpop.f32.mrf.mxu0  ;;  %2473 = vperm.xlu1 %3577, %v2463_v54   ;;  %v3640_v54 = vld [vmem:[#allocation13 + $0x70] sm:$0xff]  }
 0x174   : > { %3097 = vst [vmem:[#allocation6 + $0x20] sm:$0xff] %v719_v59   ;;  %3259 = vmatmul.mubr.bf16.gmra.mxu1 %v719_v59  ;;  %v1029_v6 = vpack.c.bf16 %v1016_v3, %v1013_v62 }
 0x175   : > { %3299 = vmatpush3.bf16.msra.mxu1 %v3604_v57  ;;  %v711_v63 = vpop.f32.mrf.mxu1  ;;  %3262 = vmatprep.mubr.msk.bf16.mxu1 %vm3988_vm0, %v3987_v7  ;;  %v3289_v9 = vpop.f32.mrf.mxu0  ;;  %v3623_v42 = vld [vmem:[#allocation6 + $0x48] sm:$0xff]  }
 0x176   : > { %3300 = vmatprep.subr.bf16.mxu1 %v3987_v7  ;;  %3103 = vst [vmem:[#allocation6 + $0x50] sm:$0xff] %v1029_v6  }
 0x177   : > { %v3236_v2 = vpop.f32.mrf.mxu1  ;;  %v1021_v11 = vpop.f32.mrf.mxu0  ;;  %2483 = vperm.xlu1 %3577, %v2465_v60   ;;  %v3646_v60 = vld [vmem:[#allocation13 + $0x58] sm:$0xff]  }
 0x179   : > { %3301 = vmatpush3.bf16.msra.mxu1 %v3605_v0  ;;  %v714_v4 = vpop.f32.mrf.mxu1  ;;  %v3292_v13 = vpop.f32.mrf.mxu0 }
 0x17a   : > { %v720_v8 = vpack.c.bf16 %v714_v4, %v711_v63  ;;  %3302 = vmatprep.subr.bf16.mxu1 %v3987_v7  ;;  %v2499_v63 = vld [vmem:[#allocation9] sm:$0x1] }
 0x17b   : > { %v3237_v10 = vpop.f32.mrf.mxu1  ;;  %v1024_v17 = vpop.f32.mrf.mxu0 }
 0x17c   : > { %3098 = vst [vmem:[#allocation6 + $0x28] sm:$0xff] %v720_v8   ;;  %3263 = vmatmul.mubr.bf16.gmra.mxu1 %v720_v8  ;;  %v1030_v21 = vpack.c.bf16 %v1024_v17, %v1021_v11  ;;  %v3613_v11 = vld [vmem:[#allocation6 + $0x20] sm:$0xff]  }
 0x17d   : > { %3303 = vmatpush3.bf16.msra.mxu1 %v3606_v5  ;;  %3310 = vmatprep.mubr.msk.bf16.mxu1 %vm3988_vm0, %v3987_v7  ;;  %v3293_v22 = vpop.f32.mrf.mxu0 }
 0x17e   : > { %3304 = vmatprep.subr.bf16.mxu1 %v3987_v7  ;;  %3104 = vst [vmem:[#allocation6 + $0x58] sm:$0xff] %v1030_v21   ;;  %v3614_v22 = vld [vmem:[#allocation6 + $0x18] sm:$0xff]  }
 0x181   : > { %3305 = vmatpush3.bf16.msra.mxu1 %v3607_v12 }
 0x182   : > { %3306 = vmatprep.subr.bf16.mxu1 %v3987_v7 }
 0x183   : > { %v3612_v8 = vld [vmem:[#allocation6 + $0x28] sm:$0xff]  }
 0x185   : > { %3307 = vmatpush3.bf16.msra.mxu1 %v3608_v18 }
 0x186   : > { %3308 = vmatprep.subr.bf16.mxu1 %v3987_v7 }
 0x189   : > { %3309 = vmatpush3.bf16.msra.mxu1 %v3609_v23 }
 0x18a   : > { %3322 = vmatprep.subr.bf16.mxu1 %v3987_v7 }
 0x18c   : > { %3311 = vmatmul.mubr.bf16.vlgmr.msra.gmra.mxu1 %v1028_v58  ;;  %v2464_v58 = vld [vmem:[%s4690_s19 + $0x10] sm:$0xff] }
 0x18d   : > { %3314 = vmatprep.mubr.msk.bf16.mxu1 %vm3988_vm0, %v3987_v7  ;;  %2478 = vperm.xlu0 %3576, %v2464_v58   ;;  %v3644_v58 = vld [vmem:[#allocation13 + $0x60] sm:$0xff]  }
 0x191   : > { %2502 = vperm.xlu0 %3576, %v2499_v63   ;;  %v3649_v63 = vld [vmem:[#allocation13 + $0x8] sm:$0xff]  }
 0x194   : > { %3315 = vmatmul.mubr.bf16.gmra.mxu1 %v1029_v6 }
 0x195   : > { %3318 = vmatprep.mubr.msk.bf16.mxu1 %vm3988_vm0, %v3987_v7 }
 0x19c   : > { %3319 = vmatmul.mubr.bf16.gmra.mxu1 %v1030_v21 }
 0x19d   : > { %3338 = vmatprep.mubr.msk.bf16.mxu1 %vm3988_vm0, %v3987_v7 }
 0x22c   : > { %v830_v37 = vpop.f32.mrf.mxu1 }
 0x22d   : > { %v853_v43 = vsub.f32 %v830_v37, %v4275_v14 }
 0x22e   : > { %v3256_v39 = vpop.f32.mrf.mxu1 }
 0x230   : > { %v833_v41 = vpop.f32.mrf.mxu1 }
 0x231   : > { %v854_v44 = vsub.f32 %v833_v41, %v4277_v15  ;;  %v3621_v41 = vld [vmem:[#allocation6 + $0x58] sm:$0xff]  }
 0x232   : > { %v3257_v45 = vpop.f32.mrf.mxu1 }
 0x233   : > { %v2977_v46 = vpack.c.bf16 %v854_v44, %v853_v43  ;;  %v3625_v44 = vld [vmem:[#allocation15] ss:$8 sps:$4 sm:$0xff]   ;;  %v3628_v45 = vld [vmem:[#allocation15 + $0x14] ss:$8 sps:$4 sm:$0xff]  }
 0x234   : > { %v838_v48 = vpop.f32.mrf.mxu1 }
 0x235   : > { %3099 = vst [vmem:[#allocation6 + $0x30] sm:$0xff] %v2977_v46   ;;  %v855_v51 = vsub.f32 %v838_v48, %v4284_v19  ;;  %v3630_v46 = vld [vmem:[#allocation15 + $0x10] ss:$8 sps:$4 sm:$0xff]   ;;  %v3633_v48 = vld [vmem:[#allocation15 + $0x20] ss:$8 sps:$4 sm:$0xff]  }
 0x236   : > { %v3260_v50 = vpop.f32.mrf.mxu1 }
 0x237   : > { %v3636_v50 = vld [vmem:[#allocation15 + $0x30] ss:$8 sps:$4 sm:$0xff]  }
 0x238   : > { %v841_v53 = vpop.f32.mrf.mxu1 }
 0x239   : > { %v856_v55 = vsub.f32 %v841_v53, %v4286_v20  ;;  %v3639_v53 = vld [vmem:[#allocation13 + $0x30] sm:$0xff]  }
 0x23a   : > { %v3261_v56 = vpop.f32.mrf.mxu1 }
 0x23b   : > { %v2982_v57 = vpack.c.bf16 %v856_v55, %v855_v51  ;;  %v3637_v51 = vld [vmem:[#allocation13 + $0x38] sm:$0xff]   ;;  %v3641_v55 = vld [vmem:[#allocation13 + $0x28] sm:$0xff]  }
 0x23c   : > { %v846_v59 = vpop.f32.mrf.mxu1  ;;  %v3611_v5 = vld [vmem:[#allocation6 + $0x30] sm:$0xff]   ;;  %3323 = vmatpush3.bf16.msra.mxu1 %v3637_v51  ;;  %v3642_v56 = vld [vmem:[#allocation13 + $0x68] sm:$0xff]  }
 0x23d   : > { %3100 = vst [vmem:[#allocation6 + $0x38] sm:$0xff] %v2982_v57   ;;  %v857_v62 = vsub.f32 %v846_v59, %v4297_v27  ;;  %3324 = vmatprep.subr.bf16.mxu1 %v3987_v7  ;;  %v3643_v57 = vld [vmem:[#allocation13 + $0x20] sm:$0xff]   ;;  %v3645_v59 = vld [vmem:[#allocation13 + $0x18] sm:$0xff]  }
 0x23e   : > { %v3264_v61 = vpop.f32.mrf.mxu1  ;;  %v3653_v51 = vld [vmem:[#allocation13 + $0xb8] sm:$0xff]  }
 0x23f   : > { %v3647_v61 = vld [vmem:[#allocation13 + $0x10] sm:$0xff]  }
 0x240   : > { %v849_v0 = vpop.f32.mrf.mxu1  ;;  %3325 = vmatpush3.bf16.msra.mxu1 %v3639_v53  ;;  %v4477_v53 = vld [vmem:[#allocation2 + $0x18] sm:$0xff] }
 0x241   : > { %v858_v1 = vsub.f32 %v849_v0, %v4295_v24  ;;  %3326 = vmatprep.subr.bf16.mxu1 %v3987_v7  ;;  %v3650_v0 = vld [vmem:[#allocation13 + $0x48] sm:$0xff]  }
 0x242   : > { %v3265_v2 = vpop.f32.mrf.mxu1 }
 0x243   : > { %v2987_v3 = vpack.c.bf16 %v858_v1, %v857_v62  ;;  %v3648_v62 = vld [vmem:[#allocation13 + $0x50] sm:$0xff]   ;;  %v3651_v1 = vld [vmem:[#allocation13] sm:$0xff]  }
 0x244   : > { %v3610_v4 = vld [vmem:[#allocation6 + $0x38] sm:$0xff]   ;;  %3327 = vmatpush3.bf16.msra.mxu1 %v3641_v55 }
 0x245   : > { %3101 = vst [vmem:[#allocation6 + $0x40] sm:$0xff] %v2987_v3   ;;  %1425 = vmatpush1.bf16.msra.mxu0 %v3610_v4  ;;  %3328 = vmatprep.subr.bf16.mxu1 %v3987_v7  ;;  %v3652_v2 = vld [vmem:[#allocation13 + $0x40] sm:$0xff]   ;;  %v1248_v3 = vpop.permute.xlu0 %1247 }
 0x246   : > { %1426 = vmatprep.subr.bf16.mxu0 %v3989_v25 }
 0x248   : > { %3329 = vmatpush3.bf16.msra.mxu1 %v3643_v57 }
 0x249   : > { %1427 = vmatpush1.bf16.msra.mxu0 %v3611_v5  ;;  %3330 = vmatprep.subr.bf16.mxu1 %v3987_v7 }
 0x24a   : > { %1428 = vmatprep.subr.bf16.mxu0 %v3989_v25 }
 0x24c   : > { %v1140_v6 = vpop.f32.mrf.mxu1  ;;  %v3624_v43 = vld [vmem:[#allocation6 + $0x40] sm:$0xff]   ;;  %3331 = vmatpush3.bf16.msra.mxu1 %v3645_v59 }
 0x24d   : > { %1429 = vmatpush1.bf16.msra.mxu0 %v3612_v8  ;;  %v1163_v12 = vsub.f32 %v1140_v6, %v4275_v14  ;;  %3332 = vmatprep.subr.bf16.mxu1 %v3987_v7 }
 0x24e   : > { %v3312_v9 = vpop.f32.mrf.mxu1  ;;  %1430 = vmatprep.subr.bf16.mxu0 %v3989_v25 }
 0x24f   : > { %v1253_v9 = vpop.permute.xlu0 %1252 }
 0x250   : > { %v1143_v10 = vpop.f32.mrf.mxu1  ;;  %3333 = vmatpush3.bf16.msra.mxu1 %v3647_v61  ;;  %v3656_v61 = vld [vmem:[#allocation13 + $0xa0] sm:$0xff]  }
 0x251   : > { %v1164_v13 = vsub.f32 %v1143_v10, %v4277_v15  ;;  %1431 = vmatpush1.bf16.msra.mxu0 %v3613_v11  ;;  %v3616_v15 = vld [vmem:[#allocation6 + $0x8] sm:$0xff]   ;;  %3334 = vmatprep.subr.bf16.mxu1 %v3987_v7 }
 0x252   : > { %v3313_v17 = vpop.f32.mrf.mxu1  ;;  %1432 = vmatprep.subr.bf16.mxu0 %v3989_v25 }
 0x253   : > { %v3007_v18 = vpack.c.bf16 %v1164_v13, %v1163_v12  ;;  %v1258_v12 = vpop.permute.xlu1 %1257 }
 0x254   : > { %v1148_v21 = vpop.f32.mrf.mxu1  ;;  %3335 = vmatpush3.bf16.msra.mxu1 %v3649_v63  ;;  %v3658_v63 = vld [vmem:[#allocation13 + $0x90] sm:$0xff]  }
 0x255   : > { %3105 = vst [vmem:[#allocation6 + $0x60] sm:$0xff] %v3007_v18   ;;  %1433 = vmatpush1.bf16.msra.mxu0 %v3614_v22  ;;  %v1165_v30 = vsub.f32 %v1148_v21, %v4284_v19  ;;  %3336 = vmatprep.subr.bf16.mxu1 %v3987_v7 }
 0x256   : > { %v3316_v23 = vpop.f32.mrf.mxu1  ;;  %1434 = vmatprep.subr.bf16.mxu0 %v3989_v25 }
 0x258   : > { %v1151_v28 = vpop.f32.mrf.mxu1  ;;  %3337 = vmatpush3.bf16.msra.mxu1 %v3651_v1  ;;  %v3660_v1 = vld [vmem:[#allocation13 + $0x80] sm:$0xff]  }
 0x259   : > { %v1166_v31 = vsub.f32 %v1151_v28, %v4286_v20  ;;  %1435 = vmatpush1.bf16.msra.mxu0 %v4356_v26  ;;  %3350 = vmatprep.subr.bf16.mxu1 %v3987_v7  ;;  %v1263_v28 = vpop.permute.xlu1 %1262 }
 0x25a   : > { %v3317_v14 = vpop.f32.mrf.mxu1  ;;  %1436 = vmatprep.subr.bf16.mxu0 %v3989_v25 }
 0x25b   : > { %v3012_v32 = vpack.c.bf16 %v1166_v31, %v1165_v30 }
 0x25c   : > { %v1156_v33 = vpop.f32.mrf.mxu1  ;;  %v3620_v40 = vld [vmem:[#allocation6 + $0x60] sm:$0xff]  }
 0x25d   : > { %3106 = vst [vmem:[#allocation6 + $0x68] sm:$0xff] %v3012_v32   ;;  %1437 = vmatpush1.bf16.msra.mxu0 %v3616_v15  ;;  %v1167_v37 = vsub.f32 %v1156_v33, %v4297_v27 }
 0x25e   : > { %v3320_v34 = vpop.f32.mrf.mxu1  ;;  %1438 = vmatprep.subr.bf16.mxu0 %v3989_v25 }
 0x260   : > { %v1159_v36 = vpop.f32.mrf.mxu1 }
 0x261   : > { %v1168_v19 = vsub.f32 %v1159_v36, %v4295_v24  ;;  %1439 = vmatpush1.bf16.msra.mxu0 %v3617_v35  ;;  %v3622_v24 = vld [vmem:[#allocation6 + $0x50] sm:$0xff]  }
 0x262   : > { %v3321_v20 = vpop.f32.mrf.mxu1  ;;  %1442 = vmatprep.subr.bf16.mxu0 %v3989_v25 }
 0x263   : > { %v3017_v38 = vpack.c.bf16 %v1168_v19, %v1167_v37 }
 0x264   : > { %v3619_v39 = vld [vmem:[#allocation6 + $0x68] sm:$0xff]  }
 0x265   : > { %3107 = vst [vmem:[#allocation6 + $0x70] sm:$0xff] %v3017_v38  }
 0x26c   : > { %v3618_v26 = vld [vmem:[#allocation6 + $0x70] sm:$0xff]  }
 0x26d   : > { %1443 = vmatpush2.bf16.msra.mxu0 %v3618_v26 }
 0x26e   : > { %1444 = vmatprep.subr.bf16.mxu0 %v3989_v25 }
 0x271   : > { %1445 = vmatpush2.bf16.msra.mxu0 %v3619_v39 }
 0x272   : > { %1446 = vmatprep.subr.bf16.mxu0 %v3989_v25 }
 0x275   : > { %1447 = vmatpush2.bf16.msra.mxu0 %v3620_v40 }
 0x276   : > { %1448 = vmatprep.subr.bf16.mxu0 %v3989_v25 }
 0x279   : > { %1449 = vmatpush2.bf16.msra.mxu0 %v3621_v41 }
 0x27a   : > { %1450 = vmatprep.subr.bf16.mxu0 %v3989_v25 }
 0x27d   : > { %1451 = vmatpush2.bf16.msra.mxu0 %v3622_v24 }
 0x27e   : > { %1452 = vmatprep.subr.bf16.mxu0 %v3989_v25 }
 0x281   : > { %1453 = vmatpush2.bf16.msra.mxu0 %v3623_v42 }
 0x282   : > { %1454 = vmatprep.subr.bf16.mxu0 %v3989_v25 }
 0x285   : > { %1455 = vmatpush2.bf16.msra.mxu0 %v3624_v43 }
 0x286   : > { %3378 = vmatprep.subr.bf16.mxu0 %v3987_v7 }
 0x288   : > { %1457 = vmatmul.mubr.bf16.vlgmr.msra.gmra.mxu0 %v3625_v44 }
 0x289   : > { %2785 = vmatprep.mubr.msk.bf16.mxu0 %vm1411_vm2, %v3628_v45  ;;  %3379 = vmatpush3.bf16.msra.mxu0 %v3638_v52  ;;  %v4465_v45 = vld [vmem:[#allocation2 + $0x10] sm:$0xff] }
 0x28a   : > { %3380 = vmatprep.subr.bf16.mxu0 %v3987_v7 }
 0x28d   : > { %3381 = vmatpush3.bf16.msra.mxu0 %v3640_v54  ;;  %v4483_v54 = vld [vmem:[#allocation2 + $0x8] sm:$0xff] }
 0x28e   : > { %3382 = vmatprep.subr.bf16.mxu0 %v3987_v7 }
 0x290   : > { %1465 = vmatmul.mubr.bf16.gmra.mxu0 %v3630_v46  ;;  %v4467_v46 = vld [vmem:[#allocation2] sm:$0xff] }
 0x291   : > { %2786 = vmatprep.mubr.msk.bf16.mxu0 %vm1411_vm2, %v3631_v47  ;;  %3383 = vmatpush3.bf16.msra.mxu0 %v3642_v56  ;;  %v3654_v56 = vld [vmem:[#allocation13 + $0xb0] sm:$0xff]  }
 0x292   : > { %3384 = vmatprep.subr.bf16.mxu0 %v3987_v7 }
 0x295   : > { %3385 = vmatpush3.bf16.msra.mxu0 %v3644_v58 }
 0x296   : > { %3386 = vmatprep.subr.bf16.mxu0 %v3987_v7 }
 0x298   : > { %1473 = vmatmul.mubr.bf16.gmra.mxu0 %v3633_v48 }
 0x299   : > { %2787 = vmatprep.mubr.msk.bf16.mxu0 %vm1411_vm2, %v3634_v49  ;;  %3387 = vmatpush3.bf16.msra.mxu0 %v3646_v60  ;;  %v3655_v60 = vld [vmem:[#allocation13 + $0xa8] sm:$0xff]  }
 0x29a   : > { %3388 = vmatprep.subr.bf16.mxu0 %v3987_v7 }
 0x29d   : > { %3389 = vmatpush3.bf16.msra.mxu0 %v3648_v62  ;;  %v3657_v62 = vld [vmem:[#allocation13 + $0x98] sm:$0xff]  }
 0x29e   : > { %3390 = vmatprep.subr.bf16.mxu0 %v3987_v7 }
 0x2a0   : > { %1481 = vmatmul.mubr.bf16.gmra.mxu0 %v3636_v50 }
 0x2a1   : > { %3394 = vmatprep.mubr.msk.bf16.mxu0 %vm3988_vm0, %v3987_v7  ;;  %3391 = vmatpush3.bf16.msra.mxu0 %v3650_v0  ;;  %v3659_v0 = vld [vmem:[#allocation13 + $0x88] sm:$0xff]  }
 0x2a2   : > { %3392 = vmatprep.subr.bf16.mxu0 %v3987_v7 }
 0x2a5   : > { %3393 = vmatpush3.bf16.msra.mxu0 %v3652_v2 }
 0x2a6   : > { %2381 = vmatprep.subr.bf16.mxu0 %v3989_v25 }
 0x348   : > { %v1458_v4 = vpop.f32.mrf.mxu0 }
 0x349   : > { %v1459_v5 = vadd.f32 %v1458_v4, %v1248_v3 }
 0x34a   : > { %v1460_v6 = vpop.f32.mrf.mxu0 }
 0x34b   : > { %v2788_v8 = vmul.f32 -1.442695, %v1459_v5 }
 0x34c   : > { %v1461_v10 = vpop.f32.mrf.mxu0 }
 0x34d   : > { %3690 = vpow2.f32 %v2788_v8  ;;  %v1462_v11 = vadd.f32 %v1461_v10, %v1253_v9  ;;  %v3661_v8 = vld [vmem:[#allocation13 + $0xf8] sm:$0xff]  }
 0x34e   : > { %v1463_v13 = vpop.f32.mrf.mxu0 }
 0x34f   : > { %v2789_v17 = vmul.f32 -1.442695, %v1462_v11 }
 0x350   : > { %v1466_v18 = vpop.f32.mrf.mxu0 }
 0x351   : > { %3692 = vpow2.f32 %v2789_v17  ;;  %v1467_v21 = vadd.f32 %v1466_v18, %v1258_v12  ;;  %v3662_v18 = vld [vmem:[#allocation13 + $0xf0] sm:$0xff]  }
 0x352   : > { %v1468_v22 = vpop.f32.mrf.mxu0 }
 0x353   : > { %v2790_v23 = vmul.f32 -1.442695, %v1467_v21 }
 0x354   : > { %v1469_v30 = vpop.f32.mrf.mxu0 }
 0x355   : > { %3694 = vpow2.f32 %v2790_v23  ;;  %v1470_v31 = vadd.f32 %v1469_v30, %v1263_v28  ;;  %v3663_v30 = vld [vmem:[#allocation13 + $0xe8] sm:$0xff]  }
 0x356   : > { %v1471_v14 = vpop.f32.mrf.mxu0 }
 0x357   : > { %v2791_v15 = vmul.f32 -1.442695, %v1470_v31 }
 0x358   : > { %v4457_v32 = vpop.f32.mrf.mxu0 }
 0x359   : > { %3696 = vpow2.f32 %v2791_v15 }
 0x35a   : > { %v3691_v33 = vpop.eup %3690  ;;  %v1476_v34 = vpop.f32.mrf.mxu0 }
 0x35b   : > { %v1513_v35 = vadd.f32 1.0, %v3691_v33 }
 0x35c   : > { %v4459_v36 = vpop.f32.mrf.mxu0 }
 0x35d   : > { %3698 = vrcp.f32 %v1513_v35  ;;  %v3664_v35 = vld [vmem:[#allocation13 + $0xe0] sm:$0xff]  }
 0x35e   : > { %v3693_v37 = vpop.eup %3692  ;;  %v1479_v19 = vpop.f32.mrf.mxu0 }
 0x35f   : > { %v1514_v20 = vadd.f32 1.0, %v3693_v37 }
 0x360   : > { %v4461_v38 = vpop.f32.mrf.mxu0 }
 0x361   : > { %3700 = vrcp.f32 %v1514_v20 }
 0x362   : > { %v3695_v26 = vpop.eup %3694  ;;  %v1484_v39 = vpop.f32.mrf.mxu0 }
 0x363   : > { %v1515_v40 = vadd.f32 1.0, %v3695_v26  ;;  %v3665_v39 = vld [vmem:[#allocation13 + $0xd8] sm:$0xff]  }
 0x364   : > { %v4463_v41 = vpop.f32.mrf.mxu0 }
 0x365   : > { %3702 = vrcp.f32 %v1515_v40 }
 0x366   : > { %v3697_v24 = vpop.eup %3696  ;;  %v1487_v42 = vpop.f32.mrf.mxu0 }
 0x367   : > { %v1516_v43 = vadd.f32 1.0, %v3697_v24 }
 0x369   : > { %3704 = vrcp.f32 %v1516_v43 }
 0x36a   : > { %v3699_v44 = vpop.eup %3698 }
 0x36b   : > { %v4470_v48 = vmul.f32 %v3699_v44, %v4465_v45 }
 0x36e   : > { %v3701_v47 = vpop.eup %3700 }
 0x36f   : > { %v4473_v49 = vmul.f32 %v3701_v47, %v4467_v46  ;;  %v3666_v47 = vld [vmem:[#allocation13 + $0xd0] sm:$0xff]  }
 0x371   : > { %v1559_v50 = vpack.c.bf16 %v4473_v49, %v4470_v48 }
 0x372   : > { %v3703_v52 = vpop.eup %3702 }
 0x373   : > { %3023 = vst [vmem:[#allocation6] sm:$0xff] %v1559_v50   ;;  %3339 = vmatmul.mubr.bf16.vlgmr.msra.gmra.mxu1 %v1559_v50  ;;  %3395 = vmatmul.mubr.bf16.vlgmr.msra.gmra.mxu0 %v1559_v50  ;;  %v4486_v55 = vmul.f32 %v3703_v52, %v4477_v53  ;;  %v3667_v50 = vld [vmem:[#allocation13 + $0xc8] sm:$0xff]  }
 0x374   : > { %3342 = vmatprep.mubr.msk.bf16.mxu1 %vm3988_vm0, %v3987_v7  ;;  %3398 = vmatprep.mubr.msk.bf16.mxu0 %vm3988_vm0, %v3987_v7  ;;  %v3686_v52 = vld [vmem:[#allocation16 + $0x4] ss:$8 sps:$4 sm:$0xff]  }
 0x375   : > { %3351 = vmatpush3.bf16.msra.mxu1 %v3653_v51  ;;  %v3668_v51 = vld [vmem:[#allocation13 + $0xc0] sm:$0xff]  }
 0x376   : > { %v3705_v57 = vpop.eup %3704  ;;  %3352 = vmatprep.subr.bf16.mxu1 %v3987_v7 }
 0x377   : > { %v4490_v58 = vmul.f32 %v3705_v57, %v4483_v54 }
 0x379   : > { %v1560_v59 = vpack.c.bf16 %v4490_v58, %v4486_v55  ;;  %3353 = vmatpush3.bf16.msra.mxu1 %v3654_v56 }
 0x37a   : > { %3354 = vmatprep.subr.bf16.mxu1 %v3987_v7 }
 0x37b   : > { %3108 = vst [vmem:[#allocation6 + $0x8] sm:$0xff] %v1560_v59   ;;  %3343 = vmatmul.mubr.bf16.gmra.mxu1 %v1560_v59  ;;  %3399 = vmatmul.mubr.bf16.gmra.mxu0 %v1560_v59 }
 0x37c   : > { %3346 = vmatprep.mubr.msk.bf16.mxu1 %vm3988_vm0, %v3987_v7  ;;  %3402 = vmatprep.mubr.msk.bf16.mxu0 %vm3988_vm0, %v3987_v7 }
 0x37d   : > { %3355 = vmatpush3.bf16.msra.mxu1 %v3655_v60 }
 0x37e   : > { %3356 = vmatprep.subr.bf16.mxu1 %v3987_v7 }
 0x381   : > { %3357 = vmatpush3.bf16.msra.mxu1 %v3656_v61 }
 0x382   : > { %3358 = vmatprep.subr.bf16.mxu1 %v3987_v7 }
 0x383   : > { %3347 = vmatmul.mubr.bf16.gmra.mxu1 %v4302_v29  ;;  %3403 = vmatmul.mubr.bf16.gmra.mxu0 %v4302_v29 }
 0x384   : > { %3366 = vmatprep.mubr.msk.bf16.mxu1 %vm3988_vm0, %v3987_v7  ;;  %2877 = vmatprep.mubr.msk.bf16.mxu0 %vm1411_vm2, %v3686_v52 }
 0x385   : > { %3359 = vmatpush3.bf16.msra.mxu1 %v3657_v62 }
 0x386   : > { %3360 = vmatprep.subr.bf16.mxu1 %v3987_v7 }
 0x389   : > { %3361 = vmatpush3.bf16.msra.mxu1 %v3658_v63 }
 0x38a   : > { %3362 = vmatprep.subr.bf16.mxu1 %v3987_v7 }
 0x38d   : > { %3363 = vmatpush3.bf16.msra.mxu1 %v3659_v0 }
 0x38e   : > { %3364 = vmatprep.subr.bf16.mxu1 %v3987_v7 }
 0x391   : > { %3365 = vmatpush3.bf16.msra.mxu1 %v3660_v1 }
 0x392   : > { %3406 = vmatprep.subr.bf16.mxu1 %v3987_v7 }
 0x433   : > { %v1703_v2 = vpop.f32.mrf.mxu1  ;;  %v2011_v29 = vpop.f32.mrf.mxu0 }
 0x435   : > { %v3340_v3 = vpop.f32.mrf.mxu1  ;;  %v3396_v4 = vpop.f32.mrf.mxu0 }
 0x437   : > { %v1706_v5 = vpop.f32.mrf.mxu1  ;;  %v2014_v6 = vpop.f32.mrf.mxu0 }
 0x438   : > { %v1726_v9 = vpack.c.bf16 %v1706_v5, %v1703_v2  ;;  %v2034_v10 = vpack.c.bf16 %v2014_v6, %v2011_v29 }
 0x439   : > { %v3341_v11 = vpop.f32.mrf.mxu1  ;;  %v3397_v12 = vpop.f32.mrf.mxu0 }
 0x43a   : > { %3110 = vst [vmem:[#allocation6 + $0x18] sm:$0xff] %v1726_v9   ;;  %3116 = vst [vmem:[#allocation6 + $0x48] sm:$0xff] %v2034_v10   ;;  %3367 = vmatmul.mubr.bf16.vlgmr.msra.gmra.mxu1 %v1726_v9 }
 0x43b   : > { %3407 = vmatpush3.bf16.msra.mxu1 %v3661_v8  ;;  %v1711_v13 = vpop.f32.mrf.mxu1  ;;  %v2019_v17 = vpop.f32.mrf.mxu0  ;;  %3370 = vmatprep.mubr.msk.bf16.mxu1 %vm3988_vm0, %v3987_v7 }
 0x43c   : > { %3408 = vmatprep.subr.bf16.mxu1 %v3987_v7 }
 0x43d   : > { %v3344_v21 = vpop.f32.mrf.mxu1  ;;  %v3400_v22 = vpop.f32.mrf.mxu0 }
 0x43f   : > { %3409 = vmatpush3.bf16.msra.mxu1 %v3662_v18  ;;  %v1714_v23 = vpop.f32.mrf.mxu1  ;;  %v2022_v28 = vpop.f32.mrf.mxu0 }
 0x440   : > { %v1727_v31 = vpack.c.bf16 %v1714_v23, %v1711_v13  ;;  %v2035_v14 = vpack.c.bf16 %v2022_v28, %v2019_v17  ;;  %3410 = vmatprep.subr.bf16.mxu1 %v3987_v7 }
 0x441   : > { %v3345_v15 = vpop.f32.mrf.mxu1  ;;  %v3401_v33 = vpop.f32.mrf.mxu0 }
 0x442   : > { %3111 = vst [vmem:[#allocation6 + $0x20] sm:$0xff] %v1727_v31   ;;  %3117 = vst [vmem:[#allocation6 + $0x50] sm:$0xff] %v2035_v14   ;;  %3371 = vmatmul.mubr.bf16.gmra.mxu1 %v1727_v31 }
 0x443   : > { %3411 = vmatpush3.bf16.msra.mxu1 %v3663_v30  ;;  %v1719_v34 = vpop.f32.mrf.mxu1  ;;  %3374 = vmatprep.mubr.msk.bf16.mxu1 %vm3988_vm0, %v3987_v7  ;;  %v2027_v37 = vpop.f32.mrf.mxu0 }
 0x444   : > { %3412 = vmatprep.subr.bf16.mxu1 %v3987_v7 }
 0x445   : > { %v3348_v19 = vpop.f32.mrf.mxu1  ;;  %v3404_v20 = vpop.f32.mrf.mxu0 }
 0x446   : > { %v3674_v19 = vld [vmem:[#allocation6 + $0x10] sm:$0xff]  }
 0x447   : > { %3413 = vmatpush3.bf16.msra.mxu1 %v3664_v35  ;;  %v1722_v26 = vpop.f32.mrf.mxu1  ;;  %v2030_v40 = vpop.f32.mrf.mxu0  ;;  %v3673_v35 = vld [vmem:[#allocation6 + $0x18] sm:$0xff]  }
 0x448   : > { %v1728_v24 = vpack.c.bf16 %v1722_v26, %v1719_v34  ;;  %3414 = vmatprep.subr.bf16.mxu1 %v3987_v7  ;;  %v2036_v42 = vpack.c.bf16 %v2030_v40, %v2027_v37 }
 0x449   : > { %v3349_v43 = vpop.f32.mrf.mxu1  ;;  %v3405_v44 = vpop.f32.mrf.mxu0  ;;  %v3672_v30 = vld [vmem:[#allocation6 + $0x20] sm:$0xff]  }
 0x44a   : > { %3112 = vst [vmem:[#allocation6 + $0x28] sm:$0xff] %v1728_v24   ;;  %3375 = vmatmul.mubr.bf16.gmra.mxu1 %v1728_v24  ;;  %3118 = vst [vmem:[#allocation6 + $0x58] sm:$0xff] %v2036_v42   ;;  %v3675_v24 = vld [vmem:[#allocation6 + $0x8] sm:$0xff]   ;;  %v3676_v44 = vld [vmem:[#allocation6] sm:$0xff]  }
 0x44b   : > { %3415 = vmatpush3.bf16.msra.mxu1 %v3665_v39  ;;  %3422 = vmatprep.mubr.msk.bf16.mxu1 %vm3988_vm0, %v3987_v7 }
 0x44c   : > { %3416 = vmatprep.subr.bf16.mxu1 %v3987_v7 }
 0x44f   : > { %3417 = vmatpush3.bf16.msra.mxu1 %v3666_v47 }
 0x450   : > { %3418 = vmatprep.subr.bf16.mxu1 %v3987_v7 }
 0x451   : > { %v3671_v22 = vld [vmem:[#allocation6 + $0x28] sm:$0xff]  }
 0x453   : > { %3419 = vmatpush3.bf16.msra.mxu1 %v3667_v50 }
 0x454   : > { %3420 = vmatprep.subr.bf16.mxu1 %v3987_v7 }
 0x457   : > { %3421 = vmatpush3.bf16.msra.mxu1 %v3668_v51 }
 0x45a   : > { %3423 = vmatmul.mubr.bf16.vlgmr.msra.gmra.mxu1 %v2034_v10  ;;  %v3730_v10 = vld [vmem:[%s4259_s21 + $0x8] sm:$0xff]  ;;  %s2205_s21 = sld [smem:[#allocation8 + %s3959_s26]] }
 0x45b   : > { %3426 = vmatprep.mubr.msk.bf16.mxu1 %vm3988_vm0, %v3987_v7 }
 0x460   : > { %p2206_p7 = scmp.gt.s32.totalorder %s2205_s21, 0  ;;  %s4692_s21 = sld [smem:[#allocation36_spill]] }
 0x462   : > { %3427 = vmatmul.mubr.bf16.gmra.mxu1 %v2035_v14  ;;  %s2207_s22 = scalar_select %p2206_p7, 1, 0 }
 0x463   : > { %3430 = vmatprep.mubr.msk.bf16.mxu1 %vm3988_vm0, %v3987_v7 }
 0x464   : > { %s2208_s12 = scvt.s32.f32 %s2207_s22 }
 0x466   : > { %s2514_s0 = ssub.f32 1.0, %s2208_s12  ;;  %s4574_s22 = scalar_lea.hbm %s4692_s21, %s2880_s17 }
 0x46a   : > { %3431 = vmatmul.mubr.bf16.gmra.mxu1 %v2036_v42 }
 0x4fa   : > { %v1838_v56 = vpop.f32.mrf.mxu1 }
 0x4fb   : > { %v1861_v60 = vsub.f32 %v1838_v56, %v4470_v48 }
 0x4fc   : > { %v3368_v57 = vpop.f32.mrf.mxu1 }
 0x4fd   : > { %v3681_v57 = vld [vmem:[#allocation6 + $0x50] sm:$0xff]  }
 0x4fe   : > { %v1841_v59 = vpop.f32.mrf.mxu1 }
 0x4ff   : > { %v1862_v61 = vsub.f32 %v1841_v59, %v4473_v49  ;;  %v3682_v59 = vld [vmem:[#allocation6 + $0x48] sm:$0xff]  }
 0x500   : > { %v3369_v62 = vpop.f32.mrf.mxu1 }
 0x501   : > { %v3052_v63 = vpack.c.bf16 %v1862_v61, %v1861_v60  ;;  %v3684_v61 = vld [vmem:[#allocation16] ss:$8 sps:$4 sm:$0xff]   ;;  %v3687_v62 = vld [vmem:[#allocation16 + $0x14] ss:$8 sps:$4 sm:$0xff]  }
 0x502   : > { %v1846_v0 = vpop.f32.mrf.mxu1 }
 0x503   : > { %3113 = vst [vmem:[#allocation6 + $0x30] sm:$0xff] %v3052_v63   ;;  %v1863_v7 = vsub.f32 %v1846_v0, %v4486_v55  ;;  %v3689_v63 = vld [vmem:[#allocation16 + $0x10] ss:$8 sps:$4 sm:$0xff]   ;;  %v1268_v0 = vpop.permute.xlu0 %1267 }
 0x504   : > { %v3372_v1 = vpop.f32.mrf.mxu1 }
 0x505   : > { %v1475_v1 = vadd.f32 %v4457_v32, %v1268_v0 }
 0x506   : > { %v1849_v2 = vpop.f32.mrf.mxu1 }
 0x507   : > { %v1864_v29 = vsub.f32 %v1849_v2, %v4490_v58  ;;  %v1273_v2 = vpop.permute.xlu1 %1272 }
 0x508   : > { %v3373_v3 = vpop.f32.mrf.mxu1 }
 0x509   : > { %v3057_v4 = vpack.c.bf16 %v1864_v29, %v1863_v7  ;;  %v1478_v7 = vadd.f32 %v4459_v36, %v1273_v2  ;;  %v2792_v29 = vmul.f32 -1.442695, %v1475_v1  ;;  %v1278_v3 = vpop.permute.xlu0 %1277 }
 0x50a   : > { %v1854_v5 = vpop.f32.mrf.mxu1  ;;  %v3670_v18 = vld [vmem:[#allocation6 + $0x30] sm:$0xff]  }
 0x50b   : > { %3114 = vst [vmem:[#allocation6 + $0x38] sm:$0xff] %v3057_v4   ;;  %v1865_v8 = vsub.f32 %v1854_v5, %v4297_v27  ;;  %v2793_v4 = vmul.f32 -1.442695, %v1478_v7  ;;  %3706 = vpow2.f32 %v2792_v29  ;;  %v1283_v5 = vpop.permute.xlu1 %1282 }
 0x50c   : > { %v3376_v6 = vpop.f32.mrf.mxu1 }
 0x50d   : > { %3708 = vpow2.f32 %v2793_v4  ;;  %v2250_v36 = vpop.permute.xlu0 %2249 }
 0x50e   : > { %v1857_v9 = vpop.f32.mrf.mxu1 }
 0x50f   : > { %v1866_v11 = vsub.f32 %v1857_v9, %v3730_v10 }
 0x510   : > { %v3377_v12 = vpop.f32.mrf.mxu1 }
 0x511   : > { %v3062_v13 = vpack.c.bf16 %v1866_v11, %v1865_v8  ;;  %v1486_v8 = vadd.f32 %v4463_v41, %v1283_v5 }
 0x512   : > { %v3669_v17 = vld [vmem:[#allocation6 + $0x38] sm:$0xff]  }
 0x513   : > { %3115 = vst [vmem:[#allocation6 + $0x40] sm:$0xff] %v3062_v13   ;;  %2382 = vmatpush1.bf16.msra.mxu0 %v3669_v17  ;;  %v2795_v9 = vmul.f32 -1.442695, %v1486_v8 }
 0x514   : > { %2383 = vmatprep.subr.bf16.mxu0 %v3989_v25 }
 0x517   : > { %2384 = vmatpush1.bf16.msra.mxu0 %v3670_v18 }
 0x518   : > { %2385 = vmatprep.subr.bf16.mxu0 %v3989_v25 }
 0x51a   : > { %v2146_v21 = vpop.f32.mrf.mxu1  ;;  %v3683_v60 = vld [vmem:[#allocation6 + $0x40] sm:$0xff]  }
 0x51b   : > { %2386 = vmatpush1.bf16.msra.mxu0 %v3671_v22  ;;  %v2169_v31 = vsub.f32 %v2146_v21, %v4470_v48 }
 0x51c   : > { %v3424_v23 = vpop.f32.mrf.mxu1  ;;  %2387 = vmatprep.subr.bf16.mxu0 %v3989_v25 }
 0x51d   : > { %v2255_v23 = vpop.permute.xlu1 %2254 }
 0x51e   : > { %v2149_v28 = vpop.f32.mrf.mxu1 }
 0x51f   : > { %v2170_v14 = vsub.f32 %v2149_v28, %v4473_v49  ;;  %2388 = vmatpush1.bf16.msra.mxu0 %v3672_v30 }
 0x520   : > { %v3425_v15 = vpop.f32.mrf.mxu1  ;;  %2389 = vmatprep.subr.bf16.mxu0 %v3989_v25 }
 0x521   : > { %v3082_v33 = vpack.c.bf16 %v2170_v14, %v2169_v31  ;;  %v2260_v14 = vpop.permute.xlu0 %2259 }
 0x522   : > { %v2154_v34 = vpop.f32.mrf.mxu1 }
 0x523   : > { %3119 = vst [vmem:[#allocation6 + $0x60] sm:$0xff] %v3082_v33   ;;  %2390 = vmatpush1.bf16.msra.mxu0 %v3673_v35  ;;  %v2171_v26 = vsub.f32 %v2154_v34, %v4486_v55 }
 0x524   : > { %v3428_v37 = vpop.f32.mrf.mxu1  ;;  %2391 = vmatprep.subr.bf16.mxu0 %v3989_v25 }
 0x525   : > { %v2265_v37 = vpop.permute.xlu1 %2264 }
 0x526   : > { %v2157_v20 = vpop.f32.mrf.mxu1 }
 0x527   : > { %v2172_v48 = vsub.f32 %v2157_v20, %v4490_v58  ;;  %2392 = vmatpush1.bf16.msra.mxu0 %v3674_v19 }
 0x528   : > { %v3429_v39 = vpop.f32.mrf.mxu1  ;;  %2393 = vmatprep.subr.bf16.mxu0 %v3989_v25 }
 0x529   : > { %v3087_v49 = vpack.c.bf16 %v2172_v48, %v2171_v26 }
 0x52a   : > { %v2162_v40 = vpop.f32.mrf.mxu1  ;;  %v3679_v56 = vld [vmem:[#allocation6 + $0x60] sm:$0xff]  }
 0x52b   : > { %3120 = vst [vmem:[#allocation6 + $0x68] sm:$0xff] %v3087_v49   ;;  %2394 = vmatpush1.bf16.msra.mxu0 %v3675_v24  ;;  %v2173_v47 = vsub.f32 %v2162_v40, %v4297_v27  ;;  %v3680_v27 = vld [vmem:[#allocation6 + $0x58] sm:$0xff]  }
 0x52c   : > { %v3432_v42 = vpop.f32.mrf.mxu1  ;;  %2395 = vmatprep.subr.bf16.mxu0 %v3989_v25 }
 0x52e   : > { %v2165_v43 = vpop.f32.mrf.mxu1 }
 0x52f   : > { %v2174_v50 = vsub.f32 %v2165_v43, %v3730_v10  ;;  %2396 = vmatpush1.bf16.msra.mxu0 %v3676_v44  ;;  %v3707_v10 = vpop.eup %3706 }
 0x530   : > { %v3433_v55 = vpop.f32.mrf.mxu1  ;;  %2399 = vmatprep.subr.bf16.mxu0 %v3989_v25  ;;  %v3709_v11 = vpop.eup %3708  ;;  %v1517_v32 = vadd.f32 1.0, %v3707_v10 }
 0x531   : > { %v3092_v58 = vpack.c.bf16 %v2174_v50, %v2173_v47  ;;  %v1518_v12 = vadd.f32 1.0, %v3709_v11 }
 0x532   : > { %v3678_v52 = vld [vmem:[#allocation6 + $0x68] sm:$0xff]  }
 0x533   : > { %3121 = vst [vmem:[#allocation6 + $0x70] sm:$0xff] %v3092_v58   ;;  %v2469_v58 = vpop.permute.xlu0 %2468 }
 0x537   : > { %v2479_v2 = vpop.permute.xlu0 %2478 }
 0x53a   : > { %v3677_v51 = vld [vmem:[#allocation6 + $0x70] sm:$0xff]  }
 0x53b   : > { %2400 = vmatpush2.bf16.msra.mxu0 %v3677_v51  ;;  %v2503_v11 = vpop.permute.xlu0 %2502 }
 0x53c   : > { %2401 = vmatprep.subr.bf16.mxu0 %v3989_v25 }
 0x53f   : > { %2402 = vmatpush2.bf16.msra.mxu0 %v3678_v52 }
 0x540   : > { %2403 = vmatprep.subr.bf16.mxu0 %v3989_v25 }
 0x543   : > { %2404 = vmatpush2.bf16.msra.mxu0 %v3679_v56 }
 0x544   : > { %2405 = vmatprep.subr.bf16.mxu0 %v3989_v25 }
 0x547   : > { %2406 = vmatpush2.bf16.msra.mxu0 %v3680_v27 }
 0x548   : > { %2407 = vmatprep.subr.bf16.mxu0 %v3989_v25 }
 0x54b   : > { %2408 = vmatpush2.bf16.msra.mxu0 %v3681_v57  ;;  %v2474_v57 = vpop.permute.xlu1 %2473 }
 0x54c   : > { %2409 = vmatprep.subr.bf16.mxu0 %v3989_v25 }
 0x54f   : > { %2410 = vmatpush2.bf16.msra.mxu0 %v3682_v59 }
 0x550   : > { %2411 = vmatprep.subr.bf16.mxu0 %v3989_v25  ;;  %v1483_v25 = vadd.f32 %v4461_v38, %v1278_v3 }
 0x552   : > { %v2794_v6 = vmul.f32 -1.442695, %v1483_v25  ;;  %v2484_v25 = vpop.permute.xlu1 %2483 }
 0x553   : > { %2412 = vmatpush2.bf16.msra.mxu0 %v3683_v60 }
 0x554   : > { %3710 = vpow2.f32 %v2794_v6 }
 0x555   : > { %3712 = vpow2.f32 %v2795_v9 }
 0x556   : > { %2414 = vmatmul.mubr.bf16.vlgmr.msra.gmra.mxu0 %v3684_v61  ;;  %3714 = vrcp.f32 %v1517_v32 }
 0x557   : > { %2878 = vmatprep.mubr.msk.bf16.mxu0 %vm1411_vm2, %v3687_v62  ;;  %3716 = vrcp.f32 %v1518_v12  ;;  %v2511_v12 = vld [vmem:[%s503_s28] sm:$0x1]  ;;  %s3845_s28 = scalar_lea.vmem %s2535_s8, 16 }
 0x558   : > { %p3846_p8 = scmp.ne.s32.totalorder %s2535_s8, %s3845_s28 }
 0x55a   : > { %p3847_p12 = pnand %p3846_p8, %p4693_p10 }
 0x55c   : > { %p3848_p2 = pneg %p3847_p12 }
 0x55e   : > { %2422 = vmatmul.mubr.bf16.gmra.mxu0 %v3689_v63 }
 0x561   : > { %v3711_v13 = vpop.eup %3710 }
 0x562   : > { %v1519_v38 = vadd.f32 1.0, %v3711_v13  ;;  %v3713_v22 = vpop.eup %3712  ;;  %v2512_v13 = vstv %s2208_s12  ;;  %s3990_s12 = smov [#allocation18]  }
 0x563   : > { %v1520_v30 = vadd.f32 1.0, %v3713_v22  ;;  %v3715_v35 = vpop.eup %3714  ;;  %s3849_s11 = sshll.u32 %s3990_s12, 4  ;;  %s3850_s11 = int_to_ptr.vmem [resolvable:$false] %s3849_s11 }
 0x564   : > { %v3717_v48 = vpop.eup %3716  ;;  %v2446_v39 = vsub.f32 1.0, %v3715_v35  ;;  %v2442_v40 = vmul.f32 %v3715_v35, %v4465_v45  ;;  %s3851_s16 = scalar_lea.vmem %s3850_s11, 32  ;;  %p3852_p0 = scmp.lt.s32.totalorder %s2535_s8, %s3850_s11 }
 0x565   : > { %v2447_v44 = vsub.f32 1.0, %v3717_v48  ;;  %v2443_v50 = vmul.f32 %v3717_v48, %v4467_v46  ;;  %p3853_p4 = scmp.lt.s32.totalorder %s3851_s16, %s3845_s28 }
 0x567   : > { %p3854_p6 = por %p3853_p4, %p3852_p0 }
 0x569   : > { %p3855_p5 = pnand %p3854_p6, %p3848_p2 }
 0x616   : > { %v2415_v17 = vpop.f32.mrf.mxu0 }
 0x617   : > { %v2416_v18 = vadd.f32 %v2415_v17, %v2250_v36 }
 0x618   : > { %v2417_v21 = vpop.f32.mrf.mxu0 }
 0x619   : > { %3718 = vtanh.f32 %v2416_v18  ;;  %v2515_v18 = vstv %s2514_s0 }
 0x61a   : > { %v2418_v28 = vpop.f32.mrf.mxu0  ;;  %3720 = vrcp.f32 %v1519_v38  ;;  %v2513_v38 = vmul.f32 %v2512_v13, %v2511_v12 }
 0x61b   : > { %v2419_v41 = vadd.f32 %v2418_v28, %v2255_v23 }
 0x61c   : > { %v2420_v31 = vpop.f32.mrf.mxu0 }
 0x61d   : > { %3722 = vtanh.f32 %v2419_v41 }
 0x61e   : > { %v2423_v15 = vpop.f32.mrf.mxu0  ;;  %3724 = vrcp.f32 %v1520_v30 }
 0x61f   : > { %v2424_v33 = vadd.f32 %v2423_v15, %v2260_v14 }
 0x620   : > { %v2425_v34 = vpop.f32.mrf.mxu0 }
 0x621   : > { %3726 = vtanh.f32 %v2424_v33 }
 0x622   : > { %v2426_v19 = vpop.f32.mrf.mxu0 }
 0x623   : > { %v2427_v20 = vadd.f32 %v2426_v19, %v2265_v37 }
 0x624   : > { %v2428_v26 = vpop.f32.mrf.mxu0 }
 0x625   : > { %3728 = vtanh.f32 %v2427_v20 }
 0x626   : > { %v3719_v49 = vpop.eup %3718 }
 0x627   : > { %v2450_v24 = vmul.f32 %v3719_v49, %v2446_v39  ;;  %v3721_v42 = vpop.eup %3720 }
 0x628   : > { %v2448_v56 = vsub.f32 1.0, %v3721_v42  ;;  %v2444_v45 = vmul.f32 %v3721_v42, %v4477_v53 }
 0x629   : > { %v2454_v43 = vadd.f32 %v2450_v24, %v2442_v40 }
 0x62a   : > { %v3723_v47 = vpop.eup %3722 }
 0x62b   : > { %2458 = vst [vmem:[#allocation2 + $0x10] sm:$0xff] %v2454_v43  ;;  %v2451_v55 = vmul.f32 %v3723_v47, %v2447_v44  ;;  %v3725_v51 = vpop.eup %3724  ;;  %v2486_v59 = vmul.f32 %v2469_v58, %v2454_v43 }
 0x62c   : > { %v2449_v63 = vsub.f32 1.0, %v3725_v51  ;;  %v2445_v46 = vmul.f32 %v3725_v51, %v4483_v54  ;;  %v2507_v54 = vsub.s32 0, %v4279_v16 }
 0x62d   : > { %v2455_v52 = vadd.f32 %v2451_v55, %v2443_v50 }
 0x62e   : > { %v3727_v27 = vpop.eup %3726  ;;  %v2508_v36 = vrot.slane %v2503_v11, %v2507_v54 }
 0x62f   : > { %2459 = vst [vmem:[#allocation2] sm:$0xff] %v2455_v52  ;;  %v2487_v60 = vmul.f32 %v2474_v57, %v2455_v52  ;;  %v2452_v61 = vmul.f32 %v3727_v27, %v2448_v56 }
 0x631   : > { %v2456_v62 = vadd.f32 %v2452_v61, %v2444_v45  ;;  %v2490_v0 = vadd.f32 %v2487_v60, %v2486_v59 }
 0x632   : > { %v3729_v1 = vpop.eup %3728 }
 0x633   : > { %2460 = vst [vmem:[#allocation2 + $0x18] sm:$0xff] %v2456_v62  ;;  %v2453_v7 = vmul.f32 %v3729_v1, %v2449_v63  ;;  %v2488_v29 = vmul.f32 %v2479_v2, %v2456_v62 }
 0x635   : > { %v2457_v3 = vadd.f32 %v2453_v7, %v2445_v46  ;;  %v2491_v4 = vadd.f32 %v2490_v0, %v2488_v29 }
 0x637   : > { %2461 = vst [vmem:[#allocation2 + $0x8] sm:$0xff] %v2457_v3  ;;  %v2489_v53 = vmul.f32 %v2484_v25, %v2457_v3 }
 0x639   : > { %v2492_v5 = vadd.f32 %v2491_v4, %v2489_v53 }
 0x63b   : > { %v2493_v6 = vrot.slane %v2492_v5, 4 }
 0x63d   : > { %v2494_v8 = vadd.f32 %v2493_v6, %v2492_v5 }
 0x63f   : > { %v2495_v9 = vrot.slane %v2494_v8, 2 }
 0x641   : > { %v2496_v10 = vadd.f32 %v2495_v9, %v2494_v8 }
 0x643   : > { %v2497_v32 = vrot.slane %v2496_v10, 1 }
 0x645   : > { %v2498_v17 = vadd.f32 %v2497_v32, %v2496_v10 }
 0x647   : > { %v2509_v16 = vadd.f32 %v2508_v36, %v2498_v17 }
 0x649   : > { %2510 = vst [vmem:[%s4263_s20] sm:$0x1] %v2509_v16  ;;  %v2516_v21 = vmul.f32 %v2515_v18, %v2509_v16 }
 0x64a   : > { %3858 = shalt.err (!%p3855_p5)
}
 0x64b   : > { %s3859_s20 = scalar_lea.hbm %s4574_s22, 16  ;;  %s3863_s13 = scalar_lea.hbm %s4692_s21, 128 }
 0x64c   : > { %p3860_p1 = scmp.ne.s32.totalorder %s4574_s22, %s3859_s20  ;;  %p3864_p11 = scmp.lt.s32.totalorder %s4574_s22, %s4692_s21 }
 0x64d   : > { %p3865_p13 = scmp.lt.s32.totalorder %s3863_s13, %s3859_s20 }
 0x64e   : > { %p3861_p9 = pnand %p3860_p1, %p4693_p10 }
 0x64f   : > { %p3866_p7 = por %p3865_p13, %p3864_p11 }
 0x650   : > { %p3862_p3 = pneg %p3861_p9 }
 0x652   : > { %p3867_p8 = pnand %p3866_p7, %p3862_p3 }
 0x654   : > { %3870 = shalt.err (!%p3867_p8)
}
 0x655   : > { %3448 = dma.vmem_to_hbm [thread:$0]  (%p4693_p10), %s2535_s8, 16, %s4574_s22, %s2520_s15   ;;  %v2517_v22 = vadd.f32 %v2516_v21, %v2513_v38 }
 0x657   : > { %2518 = vst [vmem:[#allocation3] sm:$0x1] %v2517_v22 }
 0x658 PF: > { %s4694_s26 = sld [smem:[#allocation24_spill]]  ;;  %p3475_p12 = scmp.ge.s32.totalorder %s3975_s30, 2 }
 0x659   : > { %s4695_s27 = sld [smem:[#allocation27_spill]] }
 0x65e   : > { %s2546_s28 = sand.u32 1, %s4694_s26  }
 0x65f   : > { %p4696_p2 = scmp.ne.s32.totalorder %s4695_s27, 0  ;;  %s2547_s12 = scalar_lea.sflag [#allocation12], %s2546_s28 }
 0x661   : > { %p3465_p0 = pnand %p3475_p12, %p4696_p2 }
 0x663   : > { %p3466_p4 = pneg %p3465_p0 }
 0x665   : > { %3930 = dma.done.wait (%p3466_p4), %s2547_s12, 16  }
 0x666   : > { %3932 = vsyncadd (%p3466_p4), %s2547_s12, 4294967280  ;;  %s35_s30 = sadd.s32 1, %s3975_s30   ;;  %s4697_s26 = sld [smem:[#allocation25_spill]] }
 0x667   : > { %p32_p6 = scmp.ge.s32.totalorder %s35_s30, 10   ;;  %s4698_s28 = sld [smem:[#allocation28_spill]] }
 0x668   : > { %s4699_s5 = sld [smem:[#allocation29_spill]]  ;;  %s4700_s22 = smov %s3939_s23 }
 0x669   : > { %s4701_s23 = smov %s3943_s24  ;;  %s4702_s24 = smov %s4210_s7 }
 0x66a   : > { %s4703_s0 = smov %s3951_s25  ;;  %s4704_s25 = smov %s3955_s10 }
 0x66b   : > { %s4705_s10 = smov %s4205_s4  ;;  %s4706_s27 = smov %s3971_s29 }
 0x66c   :  { %34 = sbr.rel (!%p32_p6) target bundleno = 23 (0x17), region = 130 }
 0x66e   : > { %s4707_s29 = smov %s4699_s5 }
 0x671   :  { %2551 = vsyncpa [#allocation11], 1 }
 0x672   :  { %2553 = vsyncpa [#allocation11 + $0x1], 1 }
 0x673   :  { %2554 = vsyncpa [#allocation14], 1 }
 0x674   :  { %2555 = vsyncpa [#allocation17], 1 }
 0x675   :  { %2556 = vsyncpa [#allocation12], 1 }
 0x676   :  { %2558 = vsyncpa [#allocation12 + $0x1], 1 }

</bundles_post_ra>
